<compile_context>
chip_gen: v5e
topology: v5e:2x2
jax: 0.10.0
libtpu: 0.0.40
codegen_flags: <defaults>
</compile_context>

<pallas_src>
import functools

import jax
import jax.numpy as jnp
from jax import lax
from jax.experimental import pallas as pl
from jax.experimental.pallas import tpu as pltpu


_NEG_BIG = -1e30   # bias for padded logit lanes: never the max, exp() underflows to 0


def _dct_detector_kernel(x_ref,        # (T, TB, E)    bf16  time-major batch tile
                         wih_f_ref,    # (E, 4*Hp)     bf16  fwd input weights (gate-padded)
                         whh_f_ref,    # (Hp, 4*Hp)    bf16  fwd recurrent weights (padded)
                         b_f_ref,      # (1, 4*Hp)     f32   fwd bias (ih+hh, gate-padded)
                         wih_b_ref,    # (E, 4*Hp)     bf16  bwd input weights (gate-padded)
                         b_b_ref,      # (1, 4*Hp)     f32   bwd bias (ih+hh, gate-padded)
                         w_lin_f_ref,  # (Hp, Ap)      bf16  Linear rows for fwd hidden
                         w_lin_b_ref,  # (Hp, Ap)      bf16  Linear rows for bwd hidden
                         b_lin_ref,    # (1, Ap)       f32   padded lanes = -1e30
                         out_ref,      # (TB, Ap)      f32   lane-dense log_softmax block
                         zx_ref,       # (T*TB, 4*Hp)  f32   VMEM scratch: hoisted input proj
                         *, hidden_pad):
    Hp = hidden_pad
    T, TB, E = x_ref.shape

    x = x_ref[...]                                     # bf16 (T, TB, E)
    x2d = x.reshape(T * TB, E)                         # time-major rows: row = t*TB + b

    # Hoisted input projection (+bias) for the forward direction: ONE big MXU pass,
    # streamed into VMEM scratch so the recurrence only keeps (h, c, one slab) live.
    zx_ref[...] = (jnp.dot(x2d, wih_f_ref[...], preferred_element_type=jnp.float32)
                   + b_f_ref[...])

    def gates(z):                                      # 128-lane-aligned gate slices
        i = jax.nn.sigmoid(z[:, 0 * Hp:1 * Hp])
        f = jax.nn.sigmoid(z[:, 1 * Hp:2 * Hp])
        g = jnp.tanh(z[:, 2 * Hp:3 * Hp])
        o = jax.nn.sigmoid(z[:, 3 * Hp:4 * Hp])
        return i, f, g, o

    # Backward-direction output at t = T-1: one cell step from zero state, so
    # h0 @ W_hh_bwd == 0 and c_new = i*g (W_hh_bwd drops out). Computed before the
    # forward recurrence so its latency hides under the serial chain.
    zb = (jnp.dot(x[T - 1], wih_b_ref[...], preferred_element_type=jnp.float32)
          + b_b_ref[...])                              # f32 (TB, 4*Hp)
    ib, _, gb, ob = gates(zb)
    h_bwd = ob * jnp.tanh(ib * gb)                     # f32 (TB, Hp)

    whh_f = whh_f_ref[...]                             # bf16 (Hp, 4*Hp), stays resident

    # Forward recurrence: unrolled fori_loop, one contiguous zx slab per step from scratch.
    def step(t, carry):
        h, c = carry                                   # f32 (TB, Hp)
        start = pl.multiple_of(t * TB, TB)             # TB is a multiple of 8
        z = zx_ref[pl.ds(start, TB), :] + jnp.dot(
            h.astype(jnp.bfloat16), whh_f, preferred_element_type=jnp.float32)
        i, f, g, o = gates(z)
        c = f * c + i * g
        h = o * jnp.tanh(c)
        return h, c

    h0 = jnp.zeros((TB, Hp), jnp.float32)
    c0 = jnp.zeros((TB, Hp), jnp.float32)
    h_fwd, _ = lax.fori_loop(0, T, step, (h0, c0), unroll=True)

    # Linear over [h_fwd, h_bwd] without a lane-axis concat, then log_softmax.
    # Padded logit lanes carry b_lin = -1e30, so max/logsumexp are exact over real lanes.
    logits = (jnp.dot(h_fwd.astype(jnp.bfloat16), w_lin_f_ref[...],
                      preferred_element_type=jnp.float32)
              + jnp.dot(h_bwd.astype(jnp.bfloat16), w_lin_b_ref[...],
                        preferred_element_type=jnp.float32)
              + b_lin_ref[...])                        # f32 (TB, Ap)
    m = jnp.max(logits, axis=1, keepdims=True)
    shifted = logits - m
    lse = jnp.log(jnp.sum(jnp.exp(shifted), axis=1, keepdims=True))
    out_ref[...] = shifted - lse                       # unmasked lane-dense store


def _round_up(n, m):
    return ((n + m - 1) // m) * m


def _resident(shape):
    """Whole-array block with a constant index -> stays resident across the batch grid."""
    # TODO(synk): pipeline_mode=pl.Buffered(1) would single-buffer these constant-index
    # blocks (~0.4 MiB saved); left at the default for lowering safety.
    return pl.BlockSpec(shape, lambda *_: (0,) * len(shape))


def dct_detector_forward(x, params, *, action_size, batch_tile=128, time_major=False):
    """DCTDetector forward.

    x: (B, T, E) float (batch_first, like the PyTorch module), or (T, B, E) when
       time_major=True (lets the producer skip the host-side transpose HBM pass).
    Returns (B, action_size) float32 log-probabilities.
    """
    if time_major:
        T, B, E = x.shape
        x_tbe = x
    else:
        B, T, E = x.shape
        # TODO(synk): pass time_major=True from the producer to avoid this extra HBM pass.
        x_tbe = jnp.transpose(x, (1, 0, 2))            # (T, B, E)

    H = params["whh_f"].shape[0]                       # hidden per direction
    Hp = _round_up(H, 128)                             # lane-aligned per-gate width
    A = action_size
    Ap = _round_up(A, 128)                             # lane-dense output width

    # Batch tiling: TB a multiple of 8; pad the batch only when B itself is not.
    batch_tile = max(8, _round_up(batch_tile, 8))      # 128 good everywhere; 256 on v6e/v7x
    Bp = B if B % 8 == 0 else _round_up(B, 8)
    TB = min(batch_tile, Bp)
    if Bp != B:
        x_tbe = jnp.pad(x_tbe, ((0, 0), (0, Bp - B), (0, 0)))
    x_tbe = x_tbe.astype(jnp.bfloat16)                 # bf16 matmul operand (f32 accum)

    bf16 = jnp.bfloat16

    def pad_gate_cols(w):                              # (..., 4H) -> (..., 4*Hp), zeros
        lead = w.shape[:-1]
        w4 = w.reshape(lead + (4, H))
        w4 = jnp.pad(w4, [(0, 0)] * len(lead) + [(0, 0), (0, Hp - H)])
        return w4.reshape(lead + (4 * Hp,))

    wih_f = pad_gate_cols(params["wih_f"]).astype(bf16)                              # (E,4Hp)
    whh_f = jnp.pad(pad_gate_cols(params["whh_f"]),
                    ((0, Hp - H), (0, 0))).astype(bf16)                              # (Hp,4Hp)
    b_f = pad_gate_cols(params["b_f"]).astype(jnp.float32)                           # (1,4Hp)
    wih_b = pad_gate_cols(params["wih_b"]).astype(bf16)                              # (E,4Hp)
    b_b = pad_gate_cols(params["b_b"]).astype(jnp.float32)                           # (1,4Hp)
    # params["whh_b"] is mathematically unused: backward state at t = T-1 starts from zero.
    w_lin = params["w_lin"]                                                          # (2H, A)
    w_lin_f = jnp.pad(w_lin[:H], ((0, Hp - H), (0, Ap - A))).astype(bf16)            # (Hp,Ap)
    w_lin_b = jnp.pad(w_lin[H:], ((0, Hp - H), (0, Ap - A))).astype(bf16)            # (Hp,Ap)
    b_lin = jnp.pad(params["b_lin"].astype(jnp.float32), ((0, 0), (0, Ap - A)),
                    constant_values=_NEG_BIG)                                        # (1, Ap)

    kernel = functools.partial(_dct_detector_kernel, hidden_pad=Hp)

    out = pl.pallas_call(
        kernel,
        out_shape=jax.ShapeDtypeStruct((Bp, Ap), jnp.float32),
        grid_spec=pltpu.PrefetchScalarGridSpec(
            num_scalar_prefetch=0,
            grid=(pl.cdiv(Bp, TB),),
            in_specs=[
                pl.BlockSpec((T, TB, E), lambda b: (0, b, 0)),   # x streams over batch
                _resident(wih_f.shape),
                _resident(whh_f.shape),
                _resident(b_f.shape),
                _resident(wih_b.shape),
                _resident(b_b.shape),
                _resident(w_lin_f.shape),
                _resident(w_lin_b.shape),
                _resident(b_lin.shape),
            ],
            out_specs=pl.BlockSpec((TB, Ap), lambda b: (b, 0)),
            scratch_shapes=[pltpu.VMEM((T * TB, 4 * Hp), jnp.float32)],
        ),
        compiler_params=pltpu.CompilerParams(
            dimension_semantics=("parallel",),          # batch tiles independent (v7x 2 TCs)
            vmem_limit_bytes=32 * 1024 * 1024),         # headroom for TB>=256 on v5e
    )(x_tbe, wih_f, whh_f, b_f, wih_b, b_b, w_lin_f, w_lin_b, b_lin)

    return out[:B, :A]


def init_params(key, embedding_dim, dct_hidden_dim, action_size):
    """Deterministic synthetic weights, shapes matching nn.LSTM / nn.Linear."""
    H = dct_hidden_dim // 2
    k = 1.0 / jnp.sqrt(jnp.float32(H))
    keys = jax.random.split(key, 12)

    def u(kk, shape, bound):
        return jax.random.uniform(kk, shape, jnp.float32, -bound, bound)

    # PyTorch stores weight_ih_l0 as (4H, E); we pass the transpose (E, 4H), etc.
    wih_f = u(keys[0], (embedding_dim, 4 * H), k)
    whh_f = u(keys[1], (H, 4 * H), k)
    b_f = u(keys[2], (1, 4 * H), k) + u(keys[3], (1, 4 * H), k)     # bias_ih + bias_hh
    wih_b = u(keys[4], (embedding_dim, 4 * H), k)
    whh_b = u(keys[5], (H, 4 * H), k)                               # unused (zero init state)
    b_b = u(keys[6], (1, 4 * H), k) + u(keys[7], (1, 4 * H), k)
    k_lin = 1.0 / jnp.sqrt(jnp.float32(dct_hidden_dim))
    w_lin = u(keys[8], (dct_hidden_dim, action_size), k_lin)        # transpose of nn.Linear W
    b_lin = u(keys[9], (1, action_size), k_lin)
    return dict(wih_f=wih_f, whh_f=whh_f, b_f=b_f,
                wih_b=wih_b, whh_b=whh_b, b_b=b_b,
                w_lin=w_lin, b_lin=b_lin)


def _reference_forward(x_bte, params):
    """Pure-JAX f32 reference matching PyTorch bi-LSTM + Linear + log_softmax."""
    B, T, E = x_bte.shape
    H = params["whh_f"].shape[0]

    def cell(x_t, h, c, wih, whh, b):
        z = x_t @ wih + h @ whh + b
        i = jax.nn.sigmoid(z[:, :H])
        f = jax.nn.sigmoid(z[:, H:2 * H])
        g = jnp.tanh(z[:, 2 * H:3 * H])
        o = jax.nn.sigmoid(z[:, 3 * H:])
        c = f * c + i * g
        return o * jnp.tanh(c), c

    h = jnp.zeros((B, H), jnp.float32)
    c = jnp.zeros((B, H), jnp.float32)
    for t in range(T):
        h, c = cell(x_bte[:, t, :], h, c, params["wih_f"], params["whh_f"], params["b_f"])
    h_fwd = h
    h_bwd, _ = cell(x_bte[:, T - 1, :], jnp.zeros((B, H)), jnp.zeros((B, H)),
                    params["wih_b"], params["whh_b"], params["b_b"])
    logits = jnp.concatenate([h_fwd, h_bwd], axis=1) @ params["w_lin"] + params["b_lin"]
    return jax.nn.log_softmax(logits, axis=1)


if __name__ == "__main__":
    # Small shapes consistent with the module: batch=2, seq=8, embedding_dim=32,
    # dct_hidden_dim=32 (16 per direction), action_size=4.
    B, T, E = 2, 8, 32
    dct_hidden_dim, action_size = 32, 4

    key = jax.random.PRNGKey(0)
    k_x, k_p = jax.random.split(key)
    x = jax.random.normal(k_x, (B, T, E), jnp.float32)
    params = init_params(k_p, E, dct_hidden_dim, action_size)

    out = dct_detector_forward(x, params, action_size=action_size)
    out = jax.block_until_ready(out)

    ref = _reference_forward(x, params)
    assert out.shape == (B, action_size)
    # bf16 matmul operands (f32 accumulation) -> loosened tolerance vs. the f32 reference.
    assert jnp.allclose(out, ref, atol=5e-2, rtol=5e-2)

    print("KERNEL_OK")
</pallas_src>

<mosaic_0001>
module attributes {stable_mosaic.version = 11 : i64} {
  func.func @_dct_detector_kernel(%arg0: i32, %arg1: memref<8x8x32xbf16, #tpu.memory_space<vmem>>, %arg2: memref<32x512xbf16, #tpu.memory_space<vmem>>, %arg3: memref<128x512xbf16, #tpu.memory_space<vmem>>, %arg4: memref<1x512xf32, #tpu.memory_space<vmem>>, %arg5: memref<32x512xbf16, #tpu.memory_space<vmem>>, %arg6: memref<1x512xf32, #tpu.memory_space<vmem>>, %arg7: memref<128x128xbf16, #tpu.memory_space<vmem>>, %arg8: memref<128x128xbf16, #tpu.memory_space<vmem>>, %arg9: memref<1x128xf32, #tpu.memory_space<vmem>>, %arg10: memref<8x128xf32, #tpu.memory_space<vmem>>, %arg11: memref<64x512xf32, #tpu.memory_space<vmem>>) attributes {dimension_semantics = [#tpu.dimension_semantics<parallel>], iteration_bounds = array<i64: 1>, scalar_prefetch = 0 : i64, scratch_operands = 1 : i64, tpu.core_type = #tpu.core_type<tc>, window_params = [{transform_indices = @transform_0, window_bounds = array<i64: 8, 8, 32>}, {pipeline_mode = #tpu.pipeline_mode<synchronous>, transform_indices = @transform_1, window_bounds = array<i64: 32, 512>}, {pipeline_mode = #tpu.pipeline_mode<synchronous>, transform_indices = @transform_2, window_bounds = array<i64: 128, 512>}, {pipeline_mode = #tpu.pipeline_mode<synchronous>, transform_indices = @transform_3, window_bounds = array<i64: 1, 512>}, {pipeline_mode = #tpu.pipeline_mode<synchronous>, transform_indices = @transform_4, window_bounds = array<i64: 32, 512>}, {pipeline_mode = #tpu.pipeline_mode<synchronous>, transform_indices = @transform_5, window_bounds = array<i64: 1, 512>}, {pipeline_mode = #tpu.pipeline_mode<synchronous>, transform_indices = @transform_6, window_bounds = array<i64: 128, 128>}, {pipeline_mode = #tpu.pipeline_mode<synchronous>, transform_indices = @transform_7, window_bounds = array<i64: 128, 128>}, {pipeline_mode = #tpu.pipeline_mode<synchronous>, transform_indices = @transform_8, window_bounds = array<i64: 1, 128>}, {transform_indices = @transform_9, window_bounds = array<i64: 8, 128>}]} {
    %c0 = arith.constant 0 : index
    %c0_0 = arith.constant 0 : index
    %c0_1 = arith.constant 0 : index
    %0 = vector.load %arg1[%c0, %c0_0, %c0_1] : memref<8x8x32xbf16, #tpu.memory_space<vmem>>, vector<8x8x32xbf16>
    %1 = vector.shape_cast %0 : vector<8x8x32xbf16> to vector<64x32xbf16>
    %c0_2 = arith.constant 0 : index
    %c0_3 = arith.constant 0 : index
    %2 = vector.load %arg2[%c0_2, %c0_3] : memref<32x512xbf16, #tpu.memory_space<vmem>>, vector<32x512xbf16>
    %cst = arith.constant dense<0.000000e+00> : vector<64x512xf32>
    %3 = tpu.matmul %1, %2, %cst {dimension_numbers = #tpu.dot_dimension_numbers<[1], [0], [0], [1], [0, 0, 1, 1], [], []>} : vector<64x32xbf16>, vector<32x512xbf16>, vector<64x512xf32> -> vector<64x512xf32>
    %c0_4 = arith.constant 0 : index
    %c0_5 = arith.constant 0 : index
    %4 = vector.load %arg4[%c0_4, %c0_5] : memref<1x512xf32, #tpu.memory_space<vmem>>, vector<1x512xf32>
    %5 = vector.broadcast %4 : vector<1x512xf32> to vector<64x512xf32>
    %6 = arith.addf %3, %5 : vector<64x512xf32>
    %c0_6 = arith.constant 0 : index
    %c0_7 = arith.constant 0 : index
    %7 = vector.load %arg11[%c0_6, %c0_7] : memref<64x512xf32, #tpu.memory_space<vmem>>, vector<64x512xf32>
    tpu.vector_store %arg11[%c0_6, %c0_7], %6 {strides = array<i32>} : memref<64x512xf32, #tpu.memory_space<vmem>>, vector<64x512xf32>,
    %8 = vector.extract_strided_slice %0 {offsets = [7, 0, 0], sizes = [1, 8, 32], strides = [1, 1, 1]} : vector<8x8x32xbf16> to vector<1x8x32xbf16>
    %9 = vector.shape_cast %8 : vector<1x8x32xbf16> to vector<8x32xbf16>
    %c0_8 = arith.constant 0 : index
    %c0_9 = arith.constant 0 : index
    %10 = vector.load %arg5[%c0_8, %c0_9] : memref<32x512xbf16, #tpu.memory_space<vmem>>, vector<32x512xbf16>
    %cst_10 = arith.constant dense<0.000000e+00> : vector<8x512xf32>
    %11 = tpu.matmul %9, %10, %cst_10 {dimension_numbers = #tpu.dot_dimension_numbers<[1], [0], [0], [1], [0, 0, 1, 1], [], []>} : vector<8x32xbf16>, vector<32x512xbf16>, vector<8x512xf32> -> vector<8x512xf32>
    %c0_11 = arith.constant 0 : index
    %c0_12 = arith.constant 0 : index
    %12 = vector.load %arg6[%c0_11, %c0_12] : memref<1x512xf32, #tpu.memory_space<vmem>>, vector<1x512xf32>
    %13 = vector.broadcast %12 : vector<1x512xf32> to vector<8x512xf32>
    %14 = arith.addf %11, %13 : vector<8x512xf32>
    %15 = vector.extract_strided_slice %14 {offsets = [0, 0], sizes = [8, 128], strides = [1, 1]} : vector<8x512xf32> to vector<8x128xf32>
    %16 = arith.negf %15 : vector<8x128xf32>
    %17 = math.exp %16 : vector<8x128xf32>
    %cst_13 = arith.constant 1.000000e+00 : f32
    %18 = vector.broadcast %cst_13 : f32 to vector<8x128xf32>
    %19 = arith.addf %18, %17 : vector<8x128xf32>
    %20 = arith.divf %18, %19 : vector<8x128xf32>
    %21 = vector.extract_strided_slice %14 {offsets = [0, 256], sizes = [8, 128], strides = [1, 1]} : vector<8x512xf32> to vector<8x128xf32>
    %22 = math.tanh %21 : vector<8x128xf32>
    %23 = vector.extract_strided_slice %14 {offsets = [0, 384], sizes = [8, 128], strides = [1, 1]} : vector<8x512xf32> to vector<8x128xf32>
    %24 = arith.negf %23 : vector<8x128xf32>
    %25 = math.exp %24 : vector<8x128xf32>
    %cst_14 = arith.constant 1.000000e+00 : f32
    %26 = vector.broadcast %cst_14 : f32 to vector<8x128xf32>
    %27 = arith.addf %26, %25 : vector<8x128xf32>
    %28 = arith.divf %26, %27 : vector<8x128xf32>
    %29 = arith.mulf %20, %22 : vector<8x128xf32>
    %30 = math.tanh %29 : vector<8x128xf32>
    %31 = arith.mulf %28, %30 : vector<8x128xf32>
    %c0_15 = arith.constant 0 : index
    %c0_16 = arith.constant 0 : index
    %32 = vector.load %arg3[%c0_15, %c0_16] : memref<128x512xbf16, #tpu.memory_space<vmem>>, vector<128x512xbf16>
    %cst_17 = arith.constant 0.000000e+00 : f32
    %33 = vector.broadcast %cst_17 : f32 to vector<8x128xf32>
    %cst_18 = arith.constant 0.000000e+00 : f32
    %34 = vector.broadcast %cst_18 : f32 to vector<8x128xf32>
    %c0_i32 = arith.constant 0 : i32
    %c8_i32 = arith.constant 8 : i32
    %35 = arith.muli %c0_i32, %c8_i32 : i32
    %36 = tpu.assume_multiple %35, 8 : i32
    %37 = arith.index_cast %36 : i32 to index
    %c0_19 = arith.constant 0 : index
    %38 = vector.load %arg11[%37, %c0_19] : memref<64x512xf32, #tpu.memory_space<vmem>>, vector<8x512xf32>
    %39 = arith.truncf %33 : vector<8x128xf32> to vector<8x128xbf16>
    %cst_20 = arith.constant dense<0.000000e+00> : vector<8x512xf32>
    %40 = tpu.matmul %39, %32, %cst_20 {dimension_numbers = #tpu.dot_dimension_numbers<[1], [0], [0], [1], [0, 0, 1, 1], [], []>} : vector<8x128xbf16>, vector<128x512xbf16>, vector<8x512xf32> -> vector<8x512xf32>
    %41 = arith.addf %38, %40 : vector<8x512xf32>
    %42 = vector.extract_strided_slice %41 {offsets = [0, 0], sizes = [8, 128], strides = [1, 1]} : vector<8x512xf32> to vector<8x128xf32>
    %43 = arith.negf %42 : vector<8x128xf32>
    %44 = math.exp %43 : vector<8x128xf32>
    %cst_21 = arith.constant 1.000000e+00 : f32
    %45 = vector.broadcast %cst_21 : f32 to vector<8x128xf32>
    %46 = arith.addf %45, %44 : vector<8x128xf32>
    %47 = arith.divf %45, %46 : vector<8x128xf32>
    %48 = vector.extract_strided_slice %41 {offsets = [0, 128], sizes = [8, 128], strides = [1, 1]} : vector<8x512xf32> to vector<8x128xf32>
    %49 = arith.negf %48 : vector<8x128xf32>
    %50 = math.exp %49 : vector<8x128xf32>
    %cst_22 = arith.constant 1.000000e+00 : f32
    %51 = vector.broadcast %cst_22 : f32 to vector<8x128xf32>
    %52 = arith.addf %51, %50 : vector<8x128xf32>
    %53 = arith.divf %51, %52 : vector<8x128xf32>
    %54 = vector.extract_strided_slice %41 {offsets = [0, 256], sizes = [8, 128], strides = [1, 1]} : vector<8x512xf32> to vector<8x128xf32>
    %55 = math.tanh %54 : vector<8x128xf32>
    %56 = vector.extract_strided_slice %41 {offsets = [0, 384], sizes = [8, 128], strides = [1, 1]} : vector<8x512xf32> to vector<8x128xf32>
    %57 = arith.negf %56 : vector<8x128xf32>
    %58 = math.exp %57 : vector<8x128xf32>
    %cst_23 = arith.constant 1.000000e+00 : f32
    %59 = vector.broadcast %cst_23 : f32 to vector<8x128xf32>
    %60 = arith.addf %59, %58 : vector<8x128xf32>
    %61 = arith.divf %59, %60 : vector<8x128xf32>
    %62 = arith.mulf %53, %34 : vector<8x128xf32>
    %63 = arith.mulf %47, %55 : vector<8x128xf32>
    %64 = arith.addf %62, %63 : vector<8x128xf32>
    %65 = math.tanh %64 : vector<8x128xf32>
    %66 = arith.mulf %61, %65 : vector<8x128xf32>
    %c1_i32 = arith.constant 1 : i32
    %c8_i32_24 = arith.constant 8 : i32
    %67 = arith.muli %c1_i32, %c8_i32_24 : i32
    %68 = tpu.assume_multiple %67, 8 : i32
    %69 = arith.index_cast %68 : i32 to index
    %c0_25 = arith.constant 0 : index
    %70 = vector.load %arg11[%69, %c0_25] : memref<64x512xf32, #tpu.memory_space<vmem>>, vector<8x512xf32>
    %71 = arith.truncf %66 : vector<8x128xf32> to vector<8x128xbf16>
    %cst_26 = arith.constant dense<0.000000e+00> : vector<8x512xf32>
    %72 = tpu.matmul %71, %32, %cst_26 {dimension_numbers = #tpu.dot_dimension_numbers<[1], [0], [0], [1], [0, 0, 1, 1], [], []>} : vector<8x128xbf16>, vector<128x512xbf16>, vector<8x512xf32> -> vector<8x512xf32>
    %73 = arith.addf %70, %72 : vector<8x512xf32>
    %74 = vector.extract_strided_slice %73 {offsets = [0, 0], sizes = [8, 128], strides = [1, 1]} : vector<8x512xf32> to vector<8x128xf32>
    %75 = arith.negf %74 : vector<8x128xf32>
    %76 = math.exp %75 : vector<8x128xf32>
    %cst_27 = arith.constant 1.000000e+00 : f32
    %77 = vector.broadcast %cst_27 : f32 to vector<8x128xf32>
    %78 = arith.addf %77, %76 : vector<8x128xf32>
    %79 = arith.divf %77, %78 : vector<8x128xf32>
    %80 = vector.extract_strided_slice %73 {offsets = [0, 128], sizes = [8, 128], strides = [1, 1]} : vector<8x512xf32> to vector<8x128xf32>
    %81 = arith.negf %80 : vector<8x128xf32>
    %82 = math.exp %81 : vector<8x128xf32>
    %cst_28 = arith.constant 1.000000e+00 : f32
    %83 = vector.broadcast %cst_28 : f32 to vector<8x128xf32>
    %84 = arith.addf %83, %82 : vector<8x128xf32>
    %85 = arith.divf %83, %84 : vector<8x128xf32>
    %86 = vector.extract_strided_slice %73 {offsets = [0, 256], sizes = [8, 128], strides = [1, 1]} : vector<8x512xf32> to vector<8x128xf32>
    %87 = math.tanh %86 : vector<8x128xf32>
    %88 = vector.extract_strided_slice %73 {offsets = [0, 384], sizes = [8, 128], strides = [1, 1]} : vector<8x512xf32> to vector<8x128xf32>
    %89 = arith.negf %88 : vector<8x128xf32>
    %90 = math.exp %89 : vector<8x128xf32>
    %cst_29 = arith.constant 1.000000e+00 : f32
    %91 = vector.broadcast %cst_29 : f32 to vector<8x128xf32>
    %92 = arith.addf %91, %90 : vector<8x128xf32>
    %93 = arith.divf %91, %92 : vector<8x128xf32>
    %94 = arith.mulf %85, %64 : vector<8x128xf32>
    %95 = arith.mulf %79, %87 : vector<8x128xf32>
    %96 = arith.addf %94, %95 : vector<8x128xf32>
    %97 = math.tanh %96 : vector<8x128xf32>
    %98 = arith.mulf %93, %97 : vector<8x128xf32>
    %c2_i32 = arith.constant 2 : i32
    %c8_i32_30 = arith.constant 8 : i32
    %99 = arith.muli %c2_i32, %c8_i32_30 : i32
    %100 = tpu.assume_multiple %99, 8 : i32
    %101 = arith.index_cast %100 : i32 to index
    %c0_31 = arith.constant 0 : index
    %102 = vector.load %arg11[%101, %c0_31] : memref<64x512xf32, #tpu.memory_space<vmem>>, vector<8x512xf32>
    %103 = arith.truncf %98 : vector<8x128xf32> to vector<8x128xbf16>
    %cst_32 = arith.constant dense<0.000000e+00> : vector<8x512xf32>
    %104 = tpu.matmul %103, %32, %cst_32 {dimension_numbers = #tpu.dot_dimension_numbers<[1], [0], [0], [1], [0, 0, 1, 1], [], []>} : vector<8x128xbf16>, vector<128x512xbf16>, vector<8x512xf32> -> vector<8x512xf32>
    %105 = arith.addf %102, %104 : vector<8x512xf32>
    %106 = vector.extract_strided_slice %105 {offsets = [0, 0], sizes = [8, 128], strides = [1, 1]} : vector<8x512xf32> to vector<8x128xf32>
    %107 = arith.negf %106 : vector<8x128xf32>
    %108 = math.exp %107 : vector<8x128xf32>
    %cst_33 = arith.constant 1.000000e+00 : f32
    %109 = vector.broadcast %cst_33 : f32 to vector<8x128xf32>
    %110 = arith.addf %109, %108 : vector<8x128xf32>
    %111 = arith.divf %109, %110 : vector<8x128xf32>
    %112 = vector.extract_strided_slice %105 {offsets = [0, 128], sizes = [8, 128], strides = [1, 1]} : vector<8x512xf32> to vector<8x128xf32>
    %113 = arith.negf %112 : vector<8x128xf32>
    %114 = math.exp %113 : vector<8x128xf32>
    %cst_34 = arith.constant 1.000000e+00 : f32
    %115 = vector.broadcast %cst_34 : f32 to vector<8x128xf32>
    %116 = arith.addf %115, %114 : vector<8x128xf32>
    %117 = arith.divf %115, %116 : vector<8x128xf32>
    %118 = vector.extract_strided_slice %105 {offsets = [0, 256], sizes = [8, 128], strides = [1, 1]} : vector<8x512xf32> to vector<8x128xf32>
    %119 = math.tanh %118 : vector<8x128xf32>
    %120 = vector.extract_strided_slice %105 {offsets = [0, 384], sizes = [8, 128], strides = [1, 1]} : vector<8x512xf32> to vector<8x128xf32>
    %121 = arith.negf %120 : vector<8x128xf32>
    %122 = math.exp %121 : vector<8x128xf32>
    %cst_35 = arith.constant 1.000000e+00 : f32
    %123 = vector.broadcast %cst_35 : f32 to vector<8x128xf32>
    %124 = arith.addf %123, %122 : vector<8x128xf32>
    %125 = arith.divf %123, %124 : vector<8x128xf32>
    %126 = arith.mulf %117, %96 : vector<8x128xf32>
    %127 = arith.mulf %111, %119 : vector<8x128xf32>
    %128 = arith.addf %126, %127 : vector<8x128xf32>
    %129 = math.tanh %128 : vector<8x128xf32>
    %130 = arith.mulf %125, %129 : vector<8x128xf32>
    %c3_i32 = arith.constant 3 : i32
    %c8_i32_36 = arith.constant 8 : i32
    %131 = arith.muli %c3_i32, %c8_i32_36 : i32
    %132 = tpu.assume_multiple %131, 8 : i32
    %133 = arith.index_cast %132 : i32 to index
    %c0_37 = arith.constant 0 : index
    %134 = vector.load %arg11[%133, %c0_37] : memref<64x512xf32, #tpu.memory_space<vmem>>, vector<8x512xf32>
    %135 = arith.truncf %130 : vector<8x128xf32> to vector<8x128xbf16>
    %cst_38 = arith.constant dense<0.000000e+00> : vector<8x512xf32>
    %136 = tpu.matmul %135, %32, %cst_38 {dimension_numbers = #tpu.dot_dimension_numbers<[1], [0], [0], [1], [0, 0, 1, 1], [], []>} : vector<8x128xbf16>, vector<128x512xbf16>, vector<8x512xf32> -> vector<8x512xf32>
    %137 = arith.addf %134, %136 : vector<8x512xf32>
    %138 = vector.extract_strided_slice %137 {offsets = [0, 0], sizes = [8, 128], strides = [1, 1]} : vector<8x512xf32> to vector<8x128xf32>
    %139 = arith.negf %138 : vector<8x128xf32>
    %140 = math.exp %139 : vector<8x128xf32>
    %cst_39 = arith.constant 1.000000e+00 : f32
    %141 = vector.broadcast %cst_39 : f32 to vector<8x128xf32>
    %142 = arith.addf %141, %140 : vector<8x128xf32>
    %143 = arith.divf %141, %142 : vector<8x128xf32>
    %144 = vector.extract_strided_slice %137 {offsets = [0, 128], sizes = [8, 128], strides = [1, 1]} : vector<8x512xf32> to vector<8x128xf32>
    %145 = arith.negf %144 : vector<8x128xf32>
    %146 = math.exp %145 : vector<8x128xf32>
    %cst_40 = arith.constant 1.000000e+00 : f32
    %147 = vector.broadcast %cst_40 : f32 to vector<8x128xf32>
    %148 = arith.addf %147, %146 : vector<8x128xf32>
    %149 = arith.divf %147, %148 : vector<8x128xf32>
    %150 = vector.extract_strided_slice %137 {offsets = [0, 256], sizes = [8, 128], strides = [1, 1]} : vector<8x512xf32> to vector<8x128xf32>
    %151 = math.tanh %150 : vector<8x128xf32>
    %152 = vector.extract_strided_slice %137 {offsets = [0, 384], sizes = [8, 128], strides = [1, 1]} : vector<8x512xf32> to vector<8x128xf32>
    %153 = arith.negf %152 : vector<8x128xf32>
    %154 = math.exp %153 : vector<8x128xf32>
    %cst_41 = arith.constant 1.000000e+00 : f32
    %155 = vector.broadcast %cst_41 : f32 to vector<8x128xf32>
    %156 = arith.addf %155, %154 : vector<8x128xf32>
    %157 = arith.divf %155, %156 : vector<8x128xf32>
    %158 = arith.mulf %149, %128 : vector<8x128xf32>
    %159 = arith.mulf %143, %151 : vector<8x128xf32>
    %160 = arith.addf %158, %159 : vector<8x128xf32>
    %161 = math.tanh %160 : vector<8x128xf32>
    %162 = arith.mulf %157, %161 : vector<8x128xf32>
    %c4_i32 = arith.constant 4 : i32
    %c8_i32_42 = arith.constant 8 : i32
    %163 = arith.muli %c4_i32, %c8_i32_42 : i32
    %164 = tpu.assume_multiple %163, 8 : i32
    %165 = arith.index_cast %164 : i32 to index
    %c0_43 = arith.constant 0 : index
    %166 = vector.load %arg11[%165, %c0_43] : memref<64x512xf32, #tpu.memory_space<vmem>>, vector<8x512xf32>
    %167 = arith.truncf %162 : vector<8x128xf32> to vector<8x128xbf16>
    %cst_44 = arith.constant dense<0.000000e+00> : vector<8x512xf32>
    %168 = tpu.matmul %167, %32, %cst_44 {dimension_numbers = #tpu.dot_dimension_numbers<[1], [0], [0], [1], [0, 0, 1, 1], [], []>} : vector<8x128xbf16>, vector<128x512xbf16>, vector<8x512xf32> -> vector<8x512xf32>
    %169 = arith.addf %166, %168 : vector<8x512xf32>
    %170 = vector.extract_strided_slice %169 {offsets = [0, 0], sizes = [8, 128], strides = [1, 1]} : vector<8x512xf32> to vector<8x128xf32>
    %171 = arith.negf %170 : vector<8x128xf32>
    %172 = math.exp %171 : vector<8x128xf32>
    %cst_45 = arith.constant 1.000000e+00 : f32
    %173 = vector.broadcast %cst_45 : f32 to vector<8x128xf32>
    %174 = arith.addf %173, %172 : vector<8x128xf32>
    %175 = arith.divf %173, %174 : vector<8x128xf32>
    %176 = vector.extract_strided_slice %169 {offsets = [0, 128], sizes = [8, 128], strides = [1, 1]} : vector<8x512xf32> to vector<8x128xf32>
    %177 = arith.negf %176 : vector<8x128xf32>
    %178 = math.exp %177 : vector<8x128xf32>
    %cst_46 = arith.constant 1.000000e+00 : f32
    %179 = vector.broadcast %cst_46 : f32 to vector<8x128xf32>
    %180 = arith.addf %179, %178 : vector<8x128xf32>
    %181 = arith.divf %179, %180 : vector<8x128xf32>
    %182 = vector.extract_strided_slice %169 {offsets = [0, 256], sizes = [8, 128], strides = [1, 1]} : vector<8x512xf32> to vector<8x128xf32>
    %183 = math.tanh %182 : vector<8x128xf32>
    %184 = vector.extract_strided_slice %169 {offsets = [0, 384], sizes = [8, 128], strides = [1, 1]} : vector<8x512xf32> to vector<8x128xf32>
    %185 = arith.negf %184 : vector<8x128xf32>
    %186 = math.exp %185 : vector<8x128xf32>
    %cst_47 = arith.constant 1.000000e+00 : f32
    %187 = vector.broadcast %cst_47 : f32 to vector<8x128xf32>
    %188 = arith.addf %187, %186 : vector<8x128xf32>
    %189 = arith.divf %187, %188 : vector<8x128xf32>
    %190 = arith.mulf %181, %160 : vector<8x128xf32>
    %191 = arith.mulf %175, %183 : vector<8x128xf32>
    %192 = arith.addf %190, %191 : vector<8x128xf32>
    %193 = math.tanh %192 : vector<8x128xf32>
    %194 = arith.mulf %189, %193 : vector<8x128xf32>
    %c5_i32 = arith.constant 5 : i32
    %c8_i32_48 = arith.constant 8 : i32
    %195 = arith.muli %c5_i32, %c8_i32_48 : i32
    %196 = tpu.assume_multiple %195, 8 : i32
    %197 = arith.index_cast %196 : i32 to index
    %c0_49 = arith.constant 0 : index
    %198 = vector.load %arg11[%197, %c0_49] : memref<64x512xf32, #tpu.memory_space<vmem>>, vector<8x512xf32>
    %199 = arith.truncf %194 : vector<8x128xf32> to vector<8x128xbf16>
    %cst_50 = arith.constant dense<0.000000e+00> : vector<8x512xf32>
    %200 = tpu.matmul %199, %32, %cst_50 {dimension_numbers = #tpu.dot_dimension_numbers<[1], [0], [0], [1], [0, 0, 1, 1], [], []>} : vector<8x128xbf16>, vector<128x512xbf16>, vector<8x512xf32> -> vector<8x512xf32>
    %201 = arith.addf %198, %200 : vector<8x512xf32>
    %202 = vector.extract_strided_slice %201 {offsets = [0, 0], sizes = [8, 128], strides = [1, 1]} : vector<8x512xf32> to vector<8x128xf32>
    %203 = arith.negf %202 : vector<8x128xf32>
    %204 = math.exp %203 : vector<8x128xf32>
    %cst_51 = arith.constant 1.000000e+00 : f32
    %205 = vector.broadcast %cst_51 : f32 to vector<8x128xf32>
    %206 = arith.addf %205, %204 : vector<8x128xf32>
    %207 = arith.divf %205, %206 : vector<8x128xf32>
    %208 = vector.extract_strided_slice %201 {offsets = [0, 128], sizes = [8, 128], strides = [1, 1]} : vector<8x512xf32> to vector<8x128xf32>
    %209 = arith.negf %208 : vector<8x128xf32>
    %210 = math.exp %209 : vector<8x128xf32>
    %cst_52 = arith.constant 1.000000e+00 : f32
    %211 = vector.broadcast %cst_52 : f32 to vector<8x128xf32>
    %212 = arith.addf %211, %210 : vector<8x128xf32>
    %213 = arith.divf %211, %212 : vector<8x128xf32>
    %214 = vector.extract_strided_slice %201 {offsets = [0, 256], sizes = [8, 128], strides = [1, 1]} : vector<8x512xf32> to vector<8x128xf32>
    %215 = math.tanh %214 : vector<8x128xf32>
    %216 = vector.extract_strided_slice %201 {offsets = [0, 384], sizes = [8, 128], strides = [1, 1]} : vector<8x512xf32> to vector<8x128xf32>
    %217 = arith.negf %216 : vector<8x128xf32>
    %218 = math.exp %217 : vector<8x128xf32>
    %cst_53 = arith.constant 1.000000e+00 : f32
    %219 = vector.broadcast %cst_53 : f32 to vector<8x128xf32>
    %220 = arith.addf %219, %218 : vector<8x128xf32>
    %221 = arith.divf %219, %220 : vector<8x128xf32>
    %222 = arith.mulf %213, %192 : vector<8x128xf32>
    %223 = arith.mulf %207, %215 : vector<8x128xf32>
    %224 = arith.addf %222, %223 : vector<8x128xf32>
    %225 = math.tanh %224 : vector<8x128xf32>
    %226 = arith.mulf %221, %225 : vector<8x128xf32>
    %c6_i32 = arith.constant 6 : i32
    %c8_i32_54 = arith.constant 8 : i32
    %227 = arith.muli %c6_i32, %c8_i32_54 : i32
    %228 = tpu.assume_multiple %227, 8 : i32
    %229 = arith.index_cast %228 : i32 to index
    %c0_55 = arith.constant 0 : index
    %230 = vector.load %arg11[%229, %c0_55] : memref<64x512xf32, #tpu.memory_space<vmem>>, vector<8x512xf32>
    %231 = arith.truncf %226 : vector<8x128xf32> to vector<8x128xbf16>
    %cst_56 = arith.constant dense<0.000000e+00> : vector<8x512xf32>
    %232 = tpu.matmul %231, %32, %cst_56 {dimension_numbers = #tpu.dot_dimension_numbers<[1], [0], [0], [1], [0, 0, 1, 1], [], []>} : vector<8x128xbf16>, vector<128x512xbf16>, vector<8x512xf32> -> vector<8x512xf32>
    %233 = arith.addf %230, %232 : vector<8x512xf32>
    %234 = vector.extract_strided_slice %233 {offsets = [0, 0], sizes = [8, 128], strides = [1, 1]} : vector<8x512xf32> to vector<8x128xf32>
    %235 = arith.negf %234 : vector<8x128xf32>
    %236 = math.exp %235 : vector<8x128xf32>
    %cst_57 = arith.constant 1.000000e+00 : f32
    %237 = vector.broadcast %cst_57 : f32 to vector<8x128xf32>
    %238 = arith.addf %237, %236 : vector<8x128xf32>
    %239 = arith.divf %237, %238 : vector<8x128xf32>
    %240 = vector.extract_strided_slice %233 {offsets = [0, 128], sizes = [8, 128], strides = [1, 1]} : vector<8x512xf32> to vector<8x128xf32>
    %241 = arith.negf %240 : vector<8x128xf32>
    %242 = math.exp %241 : vector<8x128xf32>
    %cst_58 = arith.constant 1.000000e+00 : f32
    %243 = vector.broadcast %cst_58 : f32 to vector<8x128xf32>
    %244 = arith.addf %243, %242 : vector<8x128xf32>
    %245 = arith.divf %243, %244 : vector<8x128xf32>
    %246 = vector.extract_strided_slice %233 {offsets = [0, 256], sizes = [8, 128], strides = [1, 1]} : vector<8x512xf32> to vector<8x128xf32>
    %247 = math.tanh %246 : vector<8x128xf32>
    %248 = vector.extract_strided_slice %233 {offsets = [0, 384], sizes = [8, 128], strides = [1, 1]} : vector<8x512xf32> to vector<8x128xf32>
    %249 = arith.negf %248 : vector<8x128xf32>
    %250 = math.exp %249 : vector<8x128xf32>
    %cst_59 = arith.constant 1.000000e+00 : f32
    %251 = vector.broadcast %cst_59 : f32 to vector<8x128xf32>
    %252 = arith.addf %251, %250 : vector<8x128xf32>
    %253 = arith.divf %251, %252 : vector<8x128xf32>
    %254 = arith.mulf %245, %224 : vector<8x128xf32>
    %255 = arith.mulf %239, %247 : vector<8x128xf32>
    %256 = arith.addf %254, %255 : vector<8x128xf32>
    %257 = math.tanh %256 : vector<8x128xf32>
    %258 = arith.mulf %253, %257 : vector<8x128xf32>
    %c7_i32 = arith.constant 7 : i32
    %c8_i32_60 = arith.constant 8 : i32
    %259 = arith.muli %c7_i32, %c8_i32_60 : i32
    %260 = tpu.assume_multiple %259, 8 : i32
    %261 = arith.index_cast %260 : i32 to index
    %c0_61 = arith.constant 0 : index
    %262 = vector.load %arg11[%261, %c0_61] : memref<64x512xf32, #tpu.memory_space<vmem>>, vector<8x512xf32>
    %263 = arith.truncf %258 : vector<8x128xf32> to vector<8x128xbf16>
    %cst_62 = arith.constant dense<0.000000e+00> : vector<8x512xf32>
    %264 = tpu.matmul %263, %32, %cst_62 {dimension_numbers = #tpu.dot_dimension_numbers<[1], [0], [0], [1], [0, 0, 1, 1], [], []>} : vector<8x128xbf16>, vector<128x512xbf16>, vector<8x512xf32> -> vector<8x512xf32>
    %265 = arith.addf %262, %264 : vector<8x512xf32>
    %266 = vector.extract_strided_slice %265 {offsets = [0, 0], sizes = [8, 128], strides = [1, 1]} : vector<8x512xf32> to vector<8x128xf32>
    %267 = arith.negf %266 : vector<8x128xf32>
    %268 = math.exp %267 : vector<8x128xf32>
    %cst_63 = arith.constant 1.000000e+00 : f32
    %269 = vector.broadcast %cst_63 : f32 to vector<8x128xf32>
    %270 = arith.addf %269, %268 : vector<8x128xf32>
    %271 = arith.divf %269, %270 : vector<8x128xf32>
    %272 = vector.extract_strided_slice %265 {offsets = [0, 128], sizes = [8, 128], strides = [1, 1]} : vector<8x512xf32> to vector<8x128xf32>
    %273 = arith.negf %272 : vector<8x128xf32>
    %274 = math.exp %273 : vector<8x128xf32>
    %cst_64 = arith.constant 1.000000e+00 : f32
    %275 = vector.broadcast %cst_64 : f32 to vector<8x128xf32>
    %276 = arith.addf %275, %274 : vector<8x128xf32>
    %277 = arith.divf %275, %276 : vector<8x128xf32>
    %278 = vector.extract_strided_slice %265 {offsets = [0, 256], sizes = [8, 128], strides = [1, 1]} : vector<8x512xf32> to vector<8x128xf32>
    %279 = math.tanh %278 : vector<8x128xf32>
    %280 = vector.extract_strided_slice %265 {offsets = [0, 384], sizes = [8, 128], strides = [1, 1]} : vector<8x512xf32> to vector<8x128xf32>
    %281 = arith.negf %280 : vector<8x128xf32>
    %282 = math.exp %281 : vector<8x128xf32>
    %cst_65 = arith.constant 1.000000e+00 : f32
    %283 = vector.broadcast %cst_65 : f32 to vector<8x128xf32>
    %284 = arith.addf %283, %282 : vector<8x128xf32>
    %285 = arith.divf %283, %284 : vector<8x128xf32>
    %286 = arith.mulf %277, %256 : vector<8x128xf32>
    %287 = arith.mulf %271, %279 : vector<8x128xf32>
    %288 = arith.addf %286, %287 : vector<8x128xf32>
    %289 = math.tanh %288 : vector<8x128xf32>
    %290 = arith.mulf %285, %289 : vector<8x128xf32>
    %c8_i32_66 = arith.constant 8 : i32
    %291 = arith.truncf %290 : vector<8x128xf32> to vector<8x128xbf16>
    %c0_67 = arith.constant 0 : index
    %c0_68 = arith.constant 0 : index
    %292 = vector.load %arg7[%c0_67, %c0_68] : memref<128x128xbf16, #tpu.memory_space<vmem>>, vector<128x128xbf16>
    %cst_69 = arith.constant dense<0.000000e+00> : vector<8x128xf32>
    %293 = tpu.matmul %291, %292, %cst_69 {dimension_numbers = #tpu.dot_dimension_numbers<[1], [0], [0], [1], [0, 0, 1, 1], [], []>} : vector<8x128xbf16>, vector<128x128xbf16>, vector<8x128xf32> -> vector<8x128xf32>
    %294 = arith.truncf %31 : vector<8x128xf32> to vector<8x128xbf16>
    %c0_70 = arith.constant 0 : index
    %c0_71 = arith.constant 0 : index
    %295 = vector.load %arg8[%c0_70, %c0_71] : memref<128x128xbf16, #tpu.memory_space<vmem>>, vector<128x128xbf16>
    %cst_72 = arith.constant dense<0.000000e+00> : vector<8x128xf32>
    %296 = tpu.matmul %294, %295, %cst_72 {dimension_numbers = #tpu.dot_dimension_numbers<[1], [0], [0], [1], [0, 0, 1, 1], [], []>} : vector<8x128xbf16>, vector<128x128xbf16>, vector<8x128xf32> -> vector<8x128xf32>
    %297 = arith.addf %293, %296 : vector<8x128xf32>
    %c0_73 = arith.constant 0 : index
    %c0_74 = arith.constant 0 : index
    %298 = vector.load %arg9[%c0_73, %c0_74] : memref<1x128xf32, #tpu.memory_space<vmem>>, vector<1x128xf32>
    %299 = vector.broadcast %298 : vector<1x128xf32> to vector<8x128xf32>
    %300 = arith.addf %297, %299 : vector<8x128xf32>
    %cst_75 = arith.constant dense<0xFF800000> : vector<8xf32>
    %301 = vector.multi_reduction <maximumf>, %300, %cst_75 [1] : vector<8x128xf32> to vector<8xf32>
    %302 = vector.shape_cast %301 : vector<8xf32> to vector<8x1xf32>
    %303 = vector.broadcast %302 : vector<8x1xf32> to vector<8x128xf32>
    %304 = arith.subf %300, %303 : vector<8x128xf32>
    %305 = math.exp %304 : vector<8x128xf32>
    %cst_76 = arith.constant dense<0.000000e+00> : vector<8xf32>
    %306 = vector.multi_reduction <add>, %305, %cst_76 [1] : vector<8x128xf32> to vector<8xf32>
    %307 = vector.shape_cast %306 : vector<8xf32> to vector<8x1xf32>
    %308 = math.log %307 : vector<8x1xf32>
    %309 = vector.broadcast %308 : vector<8x1xf32> to vector<8x128xf32>
    %310 = arith.subf %304, %309 : vector<8x128xf32>
    %c0_77 = arith.constant 0 : index
    %c0_78 = arith.constant 0 : index
    %311 = vector.load %arg10[%c0_77, %c0_78] : memref<8x128xf32, #tpu.memory_space<vmem>>, vector<8x128xf32>
    tpu.vector_store %arg10[%c0_77, %c0_78], %310 {strides = array<i32>} : memref<8x128xf32, #tpu.memory_space<vmem>>, vector<8x128xf32>,
    return
  }
  func.func @transform_0(%arg0: i32) -> (i32, i32, i32) {
    %c0_i32 = arith.constant 0 : i32
    %c0_i32_0 = arith.constant 0 : i32
    %c0_i32_1 = arith.constant 0 : i32
    return %c0_i32, %arg0, %c0_i32_0 : i32, i32, i32
  }
  func.func @transform_1(%arg0: i32) -> (i32, i32) {
    %c0_i32 = arith.constant 0 : i32
    %c0_i32_0 = arith.constant 0 : i32
    %c0_i32_1 = arith.constant 0 : i32
    return %c0_i32, %c0_i32_0 : i32, i32
  }
  func.func @transform_2(%arg0: i32) -> (i32, i32) {
    %c0_i32 = arith.constant 0 : i32
    %c0_i32_0 = arith.constant 0 : i32
    %c0_i32_1 = arith.constant 0 : i32
    return %c0_i32, %c0_i32_0 : i32, i32
  }
  func.func @transform_3(%arg0: i32) -> (i32, i32) {
    %c0_i32 = arith.constant 0 : i32
    %c0_i32_0 = arith.constant 0 : i32
    %c0_i32_1 = arith.constant 0 : i32
    return %c0_i32, %c0_i32_0 : i32, i32
  }
  func.func @transform_4(%arg0: i32) -> (i32, i32) {
    %c0_i32 = arith.constant 0 : i32
    %c0_i32_0 = arith.constant 0 : i32
    %c0_i32_1 = arith.constant 0 : i32
    return %c0_i32, %c0_i32_0 : i32, i32
  }
  func.func @transform_5(%arg0: i32) -> (i32, i32) {
    %c0_i32 = arith.constant 0 : i32
    %c0_i32_0 = arith.constant 0 : i32
    %c0_i32_1 = arith.constant 0 : i32
    return %c0_i32, %c0_i32_0 : i32, i32
  }
  func.func @transform_6(%arg0: i32) -> (i32, i32) {
    %c0_i32 = arith.constant 0 : i32
    %c0_i32_0 = arith.constant 0 : i32
    %c0_i32_1 = arith.constant 0 : i32
    return %c0_i32, %c0_i32_0 : i32, i32
  }
  func.func @transform_7(%arg0: i32) -> (i32, i32) {
    %c0_i32 = arith.constant 0 : i32
    %c0_i32_0 = arith.constant 0 : i32
    %c0_i32_1 = arith.constant 0 : i32
    return %c0_i32, %c0_i32_0 : i32, i32
  }
  func.func @transform_8(%arg0: i32) -> (i32, i32) {
    %c0_i32 = arith.constant 0 : i32
    %c0_i32_0 = arith.constant 0 : i32
    %c0_i32_1 = arith.constant 0 : i32
    return %c0_i32, %c0_i32_0 : i32, i32
  }
  func.func @transform_9(%arg0: i32) -> (i32, i32) {
    %c0_i32 = arith.constant 0 : i32
    %c0_i32_0 = arith.constant 0 : i32
    return %arg0, %c0_i32 : i32, i32
  }
}

</mosaic_0001>

<bundles_post_ra>
// kernel: tpu_custom_call.1
= control target key start
LH: loop header
LB: loop body
LE: loop exit
PB: predicated region body
PF: predicated region fallthrough
CT: control target
= control target key end

     0   :  { %14 = vsyncpa [#allocation4], 0  ;;  %s3319_s0 = inlined_call_operand.hbm [shape: bf16[8,8,32], index: 0, kind: input, shape index: {}]   ;;  %s3320_s1 = inlined_call_operand.hbm [shape: bf16[32,512], index: 1, kind: input, shape index: {}]   ;;  %s3321_s2 = inlined_call_operand.hbm [shape: bf16[128,512], index: 2, kind: input, shape index: {}]   ;;  %s3322_s3 = inlined_call_operand.hbm [shape: f32[1,512], index: 3, kind: input, shape index: {}]   ;;  %s3323_s4 = inlined_call_operand.hbm [shape: bf16[32,512], index: 4, kind: input, shape index: {}]   ;;  %s3324_s5 = inlined_call_operand.vmem [shape: f32[1,512], index: 5, kind: input, shape index: {}]   ;;  %s3325_s6 = inlined_call_operand.hbm [shape: bf16[128,128], index: 6, kind: input, shape index: {}]   ;;  %s3326_s7 = inlined_call_operand.hbm [shape: bf16[128,128], index: 7, kind: input, shape index: {}]   ;;  %s3327_s8 = inlined_call_operand.vmem [shape: f32[1,128], index: 8, kind: input, shape index: {}]   ;;  %s3328_s9 = inlined_call_operand.hbm [shape: f32[8,128], index: 9, kind: output, shape index: {}]  }
   0x1   :  { %15 = vsyncpa [#allocation7], 0 }
   0x2   :  { %16 = vsyncpa [#allocation10], 0 }
   0x3   :  { %17 = vsyncpa [#allocation13], 0  ;;  %s36_s11 = sshll.u32 %s3320_s1, 4  ;;  %s37_s11 = int_to_ptr.hbm [resolvable:$true] %s36_s11 }
   0x4   :  { %18 = vsyncpa [#allocation5], 0  ;;  %s2663_s12 = smov [#allocation6]   ;;  %s63_s16 = sshll.u32 %s3322_s3, 4  ;;  %s64_s16 = int_to_ptr.hbm [resolvable:$true] %s63_s16 }
   0x5   :  { %s38_s13 = sshll.u32 %s2663_s12, 4  ;;  %s2664_s17 = smov 256   ;;  %s39_s13 = int_to_ptr.vmem [resolvable:$true] %s38_s13 }
   0x6   :  { %s2665_s18 = smov 16   ;;  %s2666_s19 = smov [#allocation9]  }
   0x7   :  { %44 = dma.hbm_to_vmem [thread:$0]  %s37_s11, 1024, %s39_s13, [#allocation7], %s2664_s17, %s2664_s17, %s2665_s18  }
   0x8   :  { %s65_s20 = sshll.u32 %s2666_s19, 4  ;;  %s88_s22 = sshll.u32 %s3325_s6, 4  ;;  %s66_s20 = int_to_ptr.vmem [resolvable:$true] %s65_s20  ;;  %s89_s22 = int_to_ptr.hbm [resolvable:$true] %s88_s22 }
   0x9   :  { %68 = dma.hbm_to_vmem [thread:$0]  %s64_s16, 64, %s66_s20, [#allocation10]  }
   0xa   :  { %s2667_s23 = smov [#allocation12]   ;;  %s23_s26 = sshll.u32 %s3319_s0, 4  ;;  %s24_s26 = int_to_ptr.hbm [resolvable:$true] %s23_s26 }
   0xb   :  { %s90_s24 = sshll.u32 %s2667_s23, 4  ;;  %s2668_s27 = smov 64   ;;  %s91_s24 = int_to_ptr.vmem [resolvable:$true] %s90_s24 }
   0xc   :  { %s2669_s28 = smov 4   ;;  %s2670_s29 = smov [#allocation3]  }
   0xd   :  { %96 = dma.hbm_to_vmem [thread:$0]  %s89_s22, 1024, %s91_s24, [#allocation13], %s2668_s27, %s2668_s27, %s2669_s28  }
   0xe   :  { %s25_s30 = sshll.u32 %s2670_s29, 4  ;;  %s49_s12 = sshll.u32 %s3321_s2, 4  ;;  %s26_s30 = int_to_ptr.vmem [resolvable:$true] %s25_s30  ;;  %s50_s12 = int_to_ptr.hbm [resolvable:$true] %s49_s12 }
   0xf   :  { %31 = dma.hbm_to_vmem [thread:$0]  %s24_s26, 512, %s26_s30, [#allocation4], %s2668_s27, %s2668_s27, %s2669_s28  }
  0x10   :  { %s73_s14 = sshll.u32 %s3323_s4, 4  ;;  %s2671_s15 = smov [#allocation8]   ;;  %s74_s14 = int_to_ptr.hbm [resolvable:$true] %s73_s14 }
  0x11   :  { %s51_s16 = sshll.u32 %s2671_s15, 4  ;;  %s2672_s0 = smov [#allocation11]   ;;  %s52_s16 = int_to_ptr.vmem [resolvable:$true] %s51_s16 }
  0x12   :  { %57 = dma.hbm_to_vmem [thread:$0]  %s50_s12, 4096, %s52_s16, [#allocation7], %s2664_s17, %s2664_s17, %s2665_s18  }
  0x13   :  { %s75_s19 = sshll.u32 %s2672_s0, 4  ;;  %s101_s2 = sshll.u32 %s3326_s7, 4  ;;  %s76_s19 = int_to_ptr.vmem [resolvable:$true] %s75_s19  ;;  %s102_s2 = int_to_ptr.hbm [resolvable:$true] %s101_s2 }
  0x14   :  { %81 = dma.hbm_to_vmem [thread:$0]  %s74_s14, 1024, %s76_s19, [#allocation10], %s2664_s17, %s2664_s17, %s2665_s18  }
  0x15   :  { %s2673_s4 = smov [#allocation14]  }
  0x16   :  { %s103_s21 = sshll.u32 %s2673_s4, 4  ;;  %s104_s21 = int_to_ptr.vmem [resolvable:$true] %s103_s21 }
  0x17   :  { %109 = dma.hbm_to_vmem [thread:$0]  %s102_s2, 1024, %s104_s21, [#allocation13], %s2668_s27, %s2668_s27, %s2669_s28  }
  0x18   :  { %2653 = dma.done.wait [#allocation4], 512  }
  0x19   :  { %2654 = vsyncadd [#allocation4], 4294966784 }
  0x1a   :  { %2655 = dma.done.wait [#allocation7], 5120  }
  0x1b   :  { %2656 = vsyncadd [#allocation7], 4294962176 }
  0x1c   :  { %2657 = dma.done.wait [#allocation10], 1088  }
  0x1d   :  { %2658 = vsyncadd [#allocation10], 4294966208 }
  0x1e   :  { %2659 = dma.done.wait [#allocation13], 2048  }
  0x1f   :  { %2660 = vsyncadd [#allocation13], 4294965248  ;;  %v1960_v0 = vld [vmem:[#allocation6 + $0x20] sm:$0xf]  ;;  %v2245_v1 = vld [vmem:[#allocation6 + $0x2c] sm:$0xf0] }
  0x20   :  { %v1968_v2 = vld [vmem:[#allocation6 + $0x28] sm:$0xf]  ;;  %v1961_v3 = vor.u32 %v2245_v1, %v1960_v0  ;;  %v2246_v4 = vld [vmem:[#allocation6 + $0x34] sm:$0xf0]  ;;  %v2244_v5 = vld [vmem:[#allocation6 + $0x2c] sm:$0xf] }
  0x21   :  { %v1970_v6 = vld [vmem:[#allocation6 + $0x38] sm:$0xf0]  ;;  %v1969_v7 = vor.u32 %v2246_v4, %v1968_v2  ;;  %v1944_v9 = vld [vmem:[#allocation6] sm:$0xf]  ;;  %v2241_v10 = vld [vmem:[#allocation6 + $0xc] sm:$0xf0] }
  0x22   :  { %v1973_v8 = vor.u32 %v2244_v5, %v1970_v6  ;;  %v1952_v11 = vld [vmem:[#allocation6 + $0x8] sm:$0xf]  ;;  %246 = vmatpush.bf16.msra.mxu0 %v1961_v3  ;;  %2301 = vmatpush.bf16.msra.mxu1 %v1961_v3  ;;  %v1945_v12 = vor.u32 %v2241_v10, %v1944_v9  ;;  %v2242_v13 = vld [vmem:[#allocation6 + $0x14] sm:$0xf0]  ;;  %v2240_v14 = vld [vmem:[#allocation6 + $0xc] sm:$0xf] }
  0x23   :  { %v1954_v15 = vld [vmem:[#allocation6 + $0x18] sm:$0xf0]  ;;  %304 = vmatpush.bf16.msra.mxu2 %v1969_v7  ;;  %v1953_v16 = vor.u32 %v2242_v13, %v1952_v11  ;;  %v2756_v18 = vld [vmem:[#allocation3] sm:$0xff]  ;;  %vm227_vm0 = vcmask 261120   ;;  %v1962_v21 = vld [vmem:[#allocation6 + $0x30] sm:$0xf0] }
  0x24   :  { %333 = vmatpush.bf16.msra.mxu3 %v1973_v8  ;;  %v1957_v17 = vor.u32 %v2240_v14, %v1954_v15  ;;  %v2758_v19 = vld [vmem:[#allocation3 + $0x18] sm:$0xff]  ;;  %v2243_v20 = vld [vmem:[#allocation6 + $0x24] sm:$0xf]  ;;  %v2250_v22 = vld [vmem:[#allocation11 + $0x2c] sm:$0xf]  ;;  %s2675_s22 = smov [#allocation15]  }
  0x25   :  { %v2010_v23 = vld [vmem:[#allocation11 + $0x38] sm:$0xf0]  ;;  %v1965_v24 = vor.u32 %v2243_v20, %v1962_v21  ;;  %v2283_v27 = vld [vmem:[#allocation8 + $0xec] sm:$0xf0]  ;;  %v2239_v28 = vld [vmem:[#allocation6 + $0x4] sm:$0xf] }
  0x26   :  { %v2013_v25 = vor.u32 %v2250_v22, %v2010_v23  ;;  %v2133_v26 = vld [vmem:[#allocation8 + $0xe0] sm:$0xf]  ;;  %247 = vmatpush.bf16.msra.mxu0 %v1945_v12  ;;  %2302 = vmatpush.bf16.msra.mxu1 %v1945_v12  ;;  %v1946_v29 = vld [vmem:[#allocation6 + $0x10] sm:$0xf0]  ;;  %v2004_v30 = vld [vmem:[#allocation11 + $0x20] sm:$0xf] }
  0x27   :  { %v2251_v31 = vld [vmem:[#allocation11 + $0x2c] sm:$0xf0]  ;;  %305 = vmatpush.bf16.msra.mxu2 %v1953_v16  ;;  %v2760_v32 = vor.u32 %v2283_v27, %v2133_v26  ;;  %v2117_v34 = vld [vmem:[#allocation8 + $0xc0] sm:$0xf]  ;;  %v1949_v35 = vor.u32 %v2239_v28, %v1946_v29  ;;  %v2279_v36 = vld [vmem:[#allocation8 + $0xcc] sm:$0xf0] }
  0x28   :  { %334 = vmatpush.bf16.msra.mxu3 %v1957_v17  ;;  %v2005_v33 = vor.u32 %v2251_v31, %v2004_v30  ;;  %v2008_v37 = vld [vmem:[#allocation11 + $0x28] sm:$0xf]  ;;  %v2252_v38 = vld [vmem:[#allocation11 + $0x34] sm:$0xf0]  ;;  %v1992_v40 = vld [vmem:[#allocation11] sm:$0xf]  ;;  %v2771_v42 = vor.u32 %v2279_v36, %v2117_v34 }
  0x29   :  { %1974 = vmatmul.msk.bf16.vlgmr.msra.gmra.mxu0 %vm227_vm0, %v2756_v18  ;;  %1977 = vmatmul.msk.bf16.vlgmr.msra.gmra.mxu1 %vm227_vm0, %v2758_v19  ;;  %v2009_v39 = vor.u32 %v2252_v38, %v2008_v37  ;;  %v2248_v41 = vld [vmem:[#allocation11 + $0xc] sm:$0xf0]  ;;  %v2247_v44 = vld [vmem:[#allocation11 + $0xc] sm:$0xf]  ;;  %v1998_v45 = vld [vmem:[#allocation11 + $0x18] sm:$0xf0] }
  0x2a   :  { %275 = vmatpush.bf16.msrb.mxu1 %v1965_v24  ;;  %1982 = vmatmul.msk.bf16.vlgmr.msra.gmra.mxu2 %vm227_vm0, %v2756_v18  ;;  %v1993_v43 = vor.u32 %v2248_v41, %v1992_v40  ;;  %v2281_v46 = vld [vmem:[#allocation8 + $0xe4] sm:$0xf]  ;;  %v2101_v47 = vld [vmem:[#allocation8 + $0xa0] sm:$0xf]  ;;  %v2275_v48 = vld [vmem:[#allocation8 + $0xac] sm:$0xf0]  ;;  %v2001_v49 = vor.u32 %v2247_v44, %v1998_v45 }
  0x2b   :  { %471 = vmatpush.bf16.msrb.mxu2 %v2013_v25  ;;  %1986 = vmatmul.msk.bf16.vlgmr.msra.gmra.mxu3 %vm227_vm0, %v2756_v18  ;;  %v2135_v50 = vld [vmem:[#allocation8 + $0xf0] sm:$0xf0]  ;;  %v2277_v52 = vld [vmem:[#allocation8 + $0xc4] sm:$0xf]  ;;  %v2776_v54 = vor.u32 %v2275_v48, %v2101_v47  ;;  %v2085_v55 = vld [vmem:[#allocation8 + $0x80] sm:$0xf] }
  0x2c   :  { %719 = vmatpush.bf16.msrb.mxu3 %v2760_v32  ;;  %445 = vmatpush.bf16.msrb.mxu0 %v2005_v33  ;;  %v2773_v51 = vor.u32 %v2281_v46, %v2135_v50  ;;  %v2119_v53 = vld [vmem:[#allocation8 + $0xd0] sm:$0xf0]  ;;  %v2271_v56 = vld [vmem:[#allocation8 + $0x8c] sm:$0xf0]  ;;  %v2273_v58 = vld [vmem:[#allocation8 + $0xa4] sm:$0xf] }
  0x2d   :  { %v2779_v57 = vor.u32 %v2277_v52, %v2119_v53  ;;  %v2103_v59 = vld [vmem:[#allocation8 + $0xb0] sm:$0xf0]  ;;  %v2782_v60 = vor.u32 %v2271_v56, %v2085_v55  ;;  %v2069_v61 = vld [vmem:[#allocation8 + $0x60] sm:$0xf]  ;;  %v2267_v62 = vld [vmem:[#allocation8 + $0x6c] sm:$0xf0] }
  0x2e   :  { %276 = vmatpush.bf16.msrb.mxu1 %v1949_v35  ;;  %v2785_v63 = vor.u32 %v2273_v58, %v2103_v59  ;;  %v2787_v0 = vld [vmem:[#allocation3 + $0x8] sm:$0xff]  ;;  %v2269_v1 = vld [vmem:[#allocation8 + $0x84] sm:$0xf]  ;;  %v2087_v2 = vld [vmem:[#allocation8 + $0x90] sm:$0xf0]  ;;  %v2790_v3 = vor.u32 %v2267_v62, %v2069_v61  ;;  %s1904_s23 = sshll.u32 %s2675_s22, 4  ;;  %s1905_s23 = int_to_ptr.vmem [resolvable:$true] %s1904_s23 }
  0x2f   :  { %472 = vmatpush.bf16.msrb.mxu2 %v2001_v49  ;;  %v2053_v4 = vld [vmem:[#allocation8 + $0x40] sm:$0xf]  ;;  %v2263_v5 = vld [vmem:[#allocation8 + $0x4c] sm:$0xf0]  ;;  %v2793_v6 = vor.u32 %v2269_v1, %v2087_v2  ;;  %v2282_v7 = vld [vmem:[#allocation8 + $0xec] sm:$0xf] }
  0x30   :  { %720 = vmatpush.bf16.msrb.mxu3 %v2771_v42  ;;  %446 = vmatpush.bf16.msrb.mxu0 %v1993_v43  ;;  %v2265_v8 = vld [vmem:[#allocation8 + $0x64] sm:$0xf]  ;;  %v2071_v9 = vld [vmem:[#allocation8 + $0x70] sm:$0xf0]  ;;  %v2143_v10 = vld [vmem:[#allocation8 + $0xf8] sm:$0xf0]  ;;  %v2806_v14 = vor.u32 %v2263_v5, %v2053_v4 }
  0x31   :  { %v1996_v11 = vld [vmem:[#allocation11 + $0x8] sm:$0xf]  ;;  %v2249_v12 = vld [vmem:[#allocation11 + $0x14] sm:$0xf0]  ;;  %v2803_v13 = vor.u32 %v2282_v7, %v2143_v10  ;;  %v2037_v16 = vld [vmem:[#allocation8 + $0x20] sm:$0xf] }
  0x32   :  { %458 = vmatpush.bf16.msra.mxu1 %v2009_v39  ;;  %v1997_v15 = vor.u32 %v2249_v12, %v1996_v11  ;;  %v2259_v17 = vld [vmem:[#allocation8 + $0x2c] sm:$0xf0]  ;;  %v2261_v20 = vld [vmem:[#allocation8 + $0x44] sm:$0xf]  ;;  %v2278_v21 = vld [vmem:[#allocation8 + $0xcc] sm:$0xf] }
  0x33   :  { %758 = vmatpush.bf16.msra.mxu2 %v2803_v13  ;;  %v2127_v22 = vld [vmem:[#allocation8 + $0xd8] sm:$0xf0]  ;;  %v2055_v23 = vld [vmem:[#allocation8 + $0x50] sm:$0xf0]  ;;  %v2274_v25 = vld [vmem:[#allocation8 + $0xac] sm:$0xf]  ;;  %v2815_v27 = vor.u32 %v2259_v17, %v2037_v16 }
  0x34   :  { %732 = vmatpush.bf16.msra.mxu0 %v2773_v51  ;;  %721 = vmatpush.bf16.msrb.mxu3 %v2776_v54  ;;  %v2812_v24 = vor.u32 %v2278_v21, %v2127_v22  ;;  %v2111_v26 = vld [vmem:[#allocation8 + $0xb8] sm:$0xf0]  ;;  %v2818_v28 = vor.u32 %v2261_v20, %v2055_v23  ;;  %v2257_v29 = vld [vmem:[#allocation8 + $0x24] sm:$0xf]  ;;  %v2021_v31 = vld [vmem:[#allocation8] sm:$0xf] }
  0x35   :  { %v2821_v30 = vor.u32 %v2274_v25, %v2111_v26  ;;  %v2255_v33 = vld [vmem:[#allocation8 + $0xc] sm:$0xf0]  ;;  %v2039_v34 = vld [vmem:[#allocation8 + $0x30] sm:$0xf0]  ;;  %v2270_v35 = vld [vmem:[#allocation8 + $0x8c] sm:$0xf] }
  0x36   :  { %459 = vmatpush.bf16.msra.mxu1 %v1997_v15  ;;  %v2095_v36 = vld [vmem:[#allocation8 + $0x98] sm:$0xf0]  ;;  %v2824_v37 = vor.u32 %v2255_v33, %v2021_v31  ;;  %v2827_v38 = vor.u32 %v2257_v29, %v2039_v34  ;;  %v2237_v40 = vld [vmem:[#allocation3 + $0x10] sm:$0xff]  ;;  %v2253_v41 = vld [vmem:[#allocation8 + $0x4] sm:$0xf]  ;;  %v2674_v34 = vmov 0  }
  0x37   :  { %759 = vmatpush.bf16.msra.mxu2 %v2812_v24  ;;  %v2830_v39 = vor.u32 %v2270_v35, %v2095_v36  ;;  %v2023_v43 = vld [vmem:[#allocation8 + $0x10] sm:$0xf0]  ;;  %v2141_v45 = vld [vmem:[#allocation8 + $0xe8] sm:$0xf]  ;;  %v2284_v46 = vld [vmem:[#allocation8 + $0xf4] sm:$0xf0] }
  0x38   :  { %733 = vmatpush.bf16.msra.mxu0 %v2779_v57  ;;  %722 = vmatpush.bf16.msrb.mxu3 %v2782_v60  ;;  %v2834_v44 = vor.u32 %v2253_v41, %v2023_v43  ;;  %v2266_v47 = vld [vmem:[#allocation8 + $0x6c] sm:$0xf]  ;;  %v2840_v48 = vor.u32 %v2284_v46, %v2141_v45  ;;  %v2079_v49 = vld [vmem:[#allocation8 + $0x78] sm:$0xf0]  ;;  %v2125_v52 = vld [vmem:[#allocation8 + $0xc8] sm:$0xf] }
  0x39   :  { %1975 = vmatmul.msk.bf16.gmra.mxu0 %vm227_vm0, %v2787_v0  ;;  %1978 = vmatmul.msk.bf16.vlgmr.msrb.gmra.mxu1 %vm227_vm0, %v2756_v18  ;;  %v2809_v18 = vor.u32 %v2265_v8, %v2071_v9  ;;  %v2844_v50 = vor.u32 %v2266_v47, %v2079_v49  ;;  %v2280_v53 = vld [vmem:[#allocation8 + $0xd4] sm:$0xf0]  ;;  %v2262_v55 = vld [vmem:[#allocation8 + $0x4c] sm:$0xf]  ;;  %v2063_v58 = vld [vmem:[#allocation8 + $0x58] sm:$0xf0] }
  0x3a   :  { %1983 = vmatmul.msk.bf16.gmra.mxu2 %vm227_vm0, %v2787_v0  ;;  %745 = vmatpush.bf16.msrb.mxu1 %v2840_v48  ;;  %v2847_v56 = vor.u32 %v2280_v53, %v2125_v52  ;;  %v2852_v59 = vor.u32 %v2262_v55, %v2063_v58  ;;  %v2109_v61 = vld [vmem:[#allocation8 + $0xa8] sm:$0xf]  ;;  %v2276_v62 = vld [vmem:[#allocation8 + $0xb4] sm:$0xf0]  ;;  %v2047_v1 = vld [vmem:[#allocation8 + $0x38] sm:$0xf0] }
  0x3b   :  { %1987 = vmatmul.msk.bf16.gmra.mxu3 %vm227_vm0, %v2787_v0  ;;  %760 = vmatpush.bf16.msra.mxu2 %v2821_v30  ;;  %v2855_v2 = vor.u32 %v2276_v62, %v2109_v61  ;;  %v2093_v5 = vld [vmem:[#allocation8 + $0x88] sm:$0xf]  ;;  %v2272_v7 = vld [vmem:[#allocation8 + $0x94] sm:$0xf0]  ;;  %v2254_v8 = vld [vmem:[#allocation8 + $0xc] sm:$0xf] }
  0x3c   :  { %734 = vmatpush.bf16.msra.mxu0 %v2785_v63  ;;  %723 = vmatpush.bf16.msrb.mxu3 %v2790_v3  ;;  %v2031_v9 = vld [vmem:[#allocation8 + $0x18] sm:$0xf0]  ;;  %v2862_v10 = vor.u32 %v2272_v7, %v2093_v5  ;;  %v2077_v15 = vld [vmem:[#allocation8 + $0x68] sm:$0xf]  ;;  %v2268_v16 = vld [vmem:[#allocation8 + $0x74] sm:$0xf0] }
  0x3d   :  { %v2866_v11 = vor.u32 %v2254_v8, %v2031_v9  ;;  %v148_v12 = vld [vmem:[#allocation3 + $0x1c] sm:$0xf]  ;;  %v2873_v17 = vor.u32 %v2268_v16, %v2077_v15  ;;  %v2061_v20 = vld [vmem:[#allocation8 + $0x48] sm:$0xf]  ;;  %v2264_v21 = vld [vmem:[#allocation8 + $0x54] sm:$0xf0] }
  0x3e   :  { %746 = vmatpush.bf16.msrb.mxu1 %v2847_v56  ;;  %v2880_v22 = vor.u32 %v2264_v21, %v2061_v20  ;;  %v2045_v23 = vld [vmem:[#allocation8 + $0x28] sm:$0xf]  ;;  %v2260_v25 = vld [vmem:[#allocation8 + $0x34] sm:$0xf0] }
  0x3f   :  { %761 = vmatpush.bf16.msra.mxu2 %v2830_v39  ;;  %v2885_v26 = vor.u32 %v2260_v25, %v2045_v23  ;;  %v2029_v29 = vld [vmem:[#allocation8 + $0x8] sm:$0xf]  ;;  %v2256_v31 = vld [vmem:[#allocation8 + $0x14] sm:$0xf0] }
  0x40   :  { %735 = vmatpush.bf16.msra.mxu0 %v2793_v6  ;;  %724 = vmatpush.bf16.msrb.mxu3 %v2806_v14  ;;  %v2890_v33 = vor.u32 %v2256_v31, %v2029_v29 }
  0x42   :  { %747 = vmatpush.bf16.msrb.mxu1 %v2855_v2 }
  0x43   :  { %762 = vmatpush.bf16.msra.mxu2 %v2844_v50 }
  0x44   :  { %736 = vmatpush.bf16.msra.mxu0 %v2809_v18  ;;  %725 = vmatpush.bf16.msrb.mxu3 %v2815_v27 }
  0x46   :  { %748 = vmatpush.bf16.msrb.mxu1 %v2862_v10 }
  0x47   :  { %763 = vmatpush.bf16.msra.mxu2 %v2852_v59 }
  0x48   :  { %737 = vmatpush.bf16.msra.mxu0 %v2818_v28  ;;  %726 = vmatpush.bf16.msrb.mxu3 %v2824_v37 }
  0x49   :  { %1976 = vmatmul.msk.bf16.gmra.mxu0 %vm227_vm0, %v2237_v40  ;;  %1979 = vmatmul.msk.bf16.gmra.mxu1 %vm227_vm0, %v2787_v0  ;;  %v2258_v0 = vld [vmem:[#allocation8 + $0x2c] sm:$0xf] }
  0x4a   :  { %1984 = vmatmul.msk.bf16.gmra.mxu2 %vm227_vm0, %v2237_v40  ;;  %v2859_v4 = vor.u32 %v2258_v0, %v2047_v1  ;;  %749 = vmatpush.bf16.msrb.mxu1 %v2873_v17 }
  0x4b   :  { %1988 = vmatmul.msk.bf16.gmra.mxu3 %vm227_vm0, %v2237_v40 }
  0x4c   :  { %738 = vmatpush.bf16.msra.mxu0 %v2827_v38  ;;  %846 = vmatpush.bf16.msra.mxu3 %v2760_v32 }
  0x4d   :  { %764 = vmatpush.bf16.msra.mxu2 %v2859_v4 }
  0x4e   :  { %750 = vmatpush.bf16.msrb.mxu1 %v2880_v22 }
  0x50   :  { %739 = vmatpush.bf16.msra.mxu0 %v2834_v44  ;;  %847 = vmatpush.bf16.msra.mxu3 %v2771_v42 }
  0x51   :  { %765 = vmatpush.bf16.msra.mxu2 %v2866_v11 }
  0x52   :  { %751 = vmatpush.bf16.msrb.mxu1 %v2885_v26 }
  0x54   :  { %848 = vmatpush.bf16.msra.mxu3 %v2776_v54 }
  0x56   :  { %752 = vmatpush.bf16.msrb.mxu1 %v2890_v33 }
  0x58   :  { %849 = vmatpush.bf16.msra.mxu3 %v2782_v60 }
  0x59   :  { %1980 = vmatmul.msk.bf16.gmra.mxu1 %vm227_vm0, %v2237_v40  ;;  %2014 = vmatmul.msk.bf16.vlgmr.msrb.gmra.mxu0 %vm227_vm0, %v148_v12 }
  0x5a   :  { %1985 = vmatmul.msk.bf16.gmra.mxu2 %vm227_vm0, %v2758_v19  ;;  %859 = vmatpush.bf16.msrb.mxu0 %v2773_v51 }
  0x5b   :  { %1989 = vmatmul.msk.bf16.gmra.mxu3 %vm227_vm0, %v2758_v19 }
  0x5c   :  { %850 = vmatpush.bf16.msra.mxu3 %v2790_v3 }
  0x5e   :  { %860 = vmatpush.bf16.msrb.mxu0 %v2779_v57 }
  0x60   :  { %851 = vmatpush.bf16.msra.mxu3 %v2806_v14 }
  0x62   :  { %861 = vmatpush.bf16.msrb.mxu0 %v2785_v63 }
  0x64   :  { %852 = vmatpush.bf16.msra.mxu3 %v2815_v27 }
  0x66   :  { %862 = vmatpush.bf16.msrb.mxu0 %v2793_v6 }
  0x68   :  { %853 = vmatpush.bf16.msra.mxu3 %v2824_v37 }
  0x69   :  { %1981 = vmatmul.msk.bf16.gmra.mxu1 %vm227_vm0, %v2758_v19  ;;  %740 = vmatmul.bf16.vlgmr.msra.gmra.mxu0 %v2674_v34  ;;  %v157_v19 = vld [vmem:[#allocation9] sm:$0xf] }
  0x6a   :  { %2016 = vmatmul.msk.bf16.vlgmr.msrb.gmra.mxu2 %vm227_vm0, %v148_v12  ;;  %863 = vmatpush.bf16.msrb.mxu0 %v2809_v18  ;;  %v2947_v35 = vperm.slane %v157_v19, 0  ;;  %v2975_v61 = vperm.slane %v157_v19, 2  ;;  %v2977_v62 = vperm.slane %v157_v19, 3  ;;  %v2990_v15 = vperm.slane %v157_v19, 1 }
  0x6b   :  { %727 = vmatmul.bf16.vlgmr.msrb.gmra.mxu3 %v2674_v34  ;;  %885 = vmatpush.bf16.msrb.mxu2 %v2803_v13 }
  0x6c   :  { %973 = vmatpush.bf16.msrb.mxu3 %v2760_v32 }
  0x6e   :  { %864 = vmatpush.bf16.msrb.mxu0 %v2818_v28 }
  0x6f   :  { %886 = vmatpush.bf16.msrb.mxu2 %v2812_v24 }
  0x70   :  { %974 = vmatpush.bf16.msrb.mxu3 %v2771_v42 }
  0x72   :  { %865 = vmatpush.bf16.msrb.mxu0 %v2827_v38 }
  0x73   :  { %887 = vmatpush.bf16.msrb.mxu2 %v2821_v30 }
  0x74   :  { %975 = vmatpush.bf16.msrb.mxu3 %v2776_v54 }
  0x76   :  { %866 = vmatpush.bf16.msrb.mxu0 %v2834_v44 }
  0x77   :  { %888 = vmatpush.bf16.msrb.mxu2 %v2830_v39 }
  0x78   :  { %976 = vmatpush.bf16.msrb.mxu3 %v2782_v60 }
  0x79   :  { %2015 = vmatmul.msk.bf16.vlgmr.msra.gmra.mxu1 %vm227_vm0, %v148_v12 }
  0x7a   :  { %986 = vmatpush.bf16.msra.mxu0 %v2773_v51  ;;  %766 = vmatmul.bf16.vlgmr.msra.gmra.mxu2 %v2674_v34 }
  0x7b   :  { %872 = vmatpush.bf16.msra.mxu1 %v2840_v48  ;;  %889 = vmatpush.bf16.msrb.mxu2 %v2844_v50 }
  0x7c   :  { %977 = vmatpush.bf16.msrb.mxu3 %v2790_v3 }
  0x7e   :  { %987 = vmatpush.bf16.msra.mxu0 %v2779_v57 }
  0x7f   :  { %873 = vmatpush.bf16.msra.mxu1 %v2847_v56  ;;  %890 = vmatpush.bf16.msrb.mxu2 %v2852_v59 }
  0x80   :  { %978 = vmatpush.bf16.msrb.mxu3 %v2806_v14 }
  0x82   :  { %988 = vmatpush.bf16.msra.mxu0 %v2785_v63 }
  0x83   :  { %874 = vmatpush.bf16.msra.mxu1 %v2855_v2  ;;  %891 = vmatpush.bf16.msrb.mxu2 %v2859_v4 }
  0x84   :  { %979 = vmatpush.bf16.msrb.mxu3 %v2815_v27 }
  0x86   :  { %989 = vmatpush.bf16.msra.mxu0 %v2793_v6 }
  0x87   :  { %875 = vmatpush.bf16.msra.mxu1 %v2862_v10  ;;  %892 = vmatpush.bf16.msrb.mxu2 %v2866_v11 }
  0x88   :  { %980 = vmatpush.bf16.msrb.mxu3 %v2824_v37 }
  0x89   :  { %753 = vmatmul.bf16.vlgmr.msrb.gmra.mxu1 %v2674_v34 }
  0x8a   :  { %990 = vmatpush.bf16.msra.mxu0 %v2809_v18 }
  0x8b   :  { %1012 = vmatpush.bf16.msra.mxu2 %v2803_v13  ;;  %876 = vmatpush.bf16.msra.mxu1 %v2873_v17 }
  0x8e   :  { %991 = vmatpush.bf16.msra.mxu0 %v2818_v28 }
  0x8f   :  { %1013 = vmatpush.bf16.msra.mxu2 %v2812_v24  ;;  %877 = vmatpush.bf16.msra.mxu1 %v2880_v22 }
  0x92   :  { %992 = vmatpush.bf16.msra.mxu0 %v2827_v38 }
  0x93   :  { %1014 = vmatpush.bf16.msra.mxu2 %v2821_v30  ;;  %878 = vmatpush.bf16.msra.mxu1 %v2885_v26 }
  0x96   :  { %993 = vmatpush.bf16.msra.mxu0 %v2834_v44 }
  0x97   :  { %1015 = vmatpush.bf16.msra.mxu2 %v2830_v39  ;;  %879 = vmatpush.bf16.msra.mxu1 %v2890_v33 }
  0x9b   :  { %999 = vmatpush.bf16.msrb.mxu1 %v2840_v48  ;;  %1016 = vmatpush.bf16.msra.mxu2 %v2844_v50 }
  0x9f   :  { %1000 = vmatpush.bf16.msrb.mxu1 %v2847_v56  ;;  %1017 = vmatpush.bf16.msra.mxu2 %v2852_v59 }
  0xa3   :  { %1001 = vmatpush.bf16.msrb.mxu1 %v2855_v2  ;;  %1018 = vmatpush.bf16.msra.mxu2 %v2859_v4 }
  0xa6   :  { %v2951_v36 = vpop.f32.mrf.mxu0  ;;  %v264_v40 = vpop.f32.mrf.mxu1 }
  0xa7   :  { %1002 = vmatpush.bf16.msrb.mxu1 %v2862_v10  ;;  %1019 = vmatpush.bf16.msra.mxu2 %v2866_v11  ;;  %v2954_v41 = vadd.f32 %v264_v40, %v2947_v35 }
  0xa9   :  { %3329 = vst [vmem:[#allocation21_spill] sm:$0xff] %v2954_v41 }
  0xab   :  { %1003 = vmatpush.bf16.msrb.mxu1 %v2873_v17 }
  0xad   :  { %v2958_v43 = vpop.f32.mrf.mxu2 }
  0xae   :  { %v2960_v45 = vpop.f32.mrf.mxu3  ;;  %v2962_v46 = vpop.f32.mrf.mxu0 }
  0xaf   :  { %1004 = vmatpush.bf16.msrb.mxu1 %v2880_v22  ;;  %v2964_v47 = vpop.f32.mrf.mxu1 }
  0xb0   :  { %3330 = vst [vmem:[#allocation22_spill] sm:$0xff] %v2964_v47 }
  0xb3   :  { %1005 = vmatpush.bf16.msrb.mxu1 %v2885_v26 }
  0xb5   :  { %v2968_v49 = vpop.f32.mrf.mxu2 }
  0xb6   :  { %3331 = vst [vmem:[#allocation23_spill] sm:$0xff] %v2968_v49  ;;  %v2970_v52 = vpop.f32.mrf.mxu3  ;;  %v254_v53 = vpop.f32.mrf.mxu0 }
  0xb7   :  { %1006 = vmatpush.bf16.msrb.mxu1 %v2890_v33  ;;  %3332 = vst [vmem:[#allocation24_spill] sm:$0xff] %v2970_v52  ;;  %v278_v55 = vpop.f32.mrf.mxu1  ;;  %v2973_v58 = vadd.f32 %v254_v53, %v2947_v35 }
  0xb9   :  { %3333 = vst [vmem:[#allocation25_spill] sm:$0xff] %v2973_v58 }
  0xbd   :  { %v312_v0 = vpop.f32.mrf.mxu2 }
  0xbe   :  { %v341_v1 = vpop.f32.mrf.mxu3  ;;  %v2980_v5 = vadd.f32 %v312_v0, %v2975_v61  ;;  %v256_v8 = vpop.f32.mrf.mxu0 }
  0xbf   :  { %v2983_v7 = vadd.f32 %v341_v1, %v2977_v62  ;;  %v2985_v9 = vpop.f32.mrf.mxu1  ;;  %v2988_v12 = vadd.f32 %v256_v8, %v2947_v35 }
  0xc0   :  { %3334 = vst [vmem:[#allocation26_spill] sm:$0xff] %v2980_v5 }
  0xc1   :  { %3335 = vst [vmem:[#allocation27_spill] sm:$0xff] %v2983_v7 }
  0xc2   :  { %3336 = vst [vmem:[#allocation28_spill] sm:$0xff] %v2988_v12 }
  0xc5   :  { %v314_v16 = vpop.f32.mrf.mxu2 }
  0xc6   :  { %v343_v20 = vpop.f32.mrf.mxu3  ;;  %v2993_v21 = vadd.f32 %v314_v16, %v2975_v61  ;;  %v259_v25 = vpop.f32.mrf.mxu0 }
  0xc7   :  { %v2996_v23 = vadd.f32 %v343_v20, %v2977_v62  ;;  %v283_v29 = vpop.f32.mrf.mxu1  ;;  %v2999_v31 = vadd.f32 %v259_v25, %v2947_v35  ;;  %v396_v25 = vld [vmem:[%s3324_s5] sm:$0xf] }
  0xc8   :  { %3337 = vst [vmem:[#allocation29_spill] sm:$0xff] %v2993_v21  ;;  %v3002_v34 = vadd.f32 %v283_v29, %v2990_v15  ;;  %v398_v29 = vperm.slane %v396_v25, 0 }
  0xc9   :  { %3338 = vst [vmem:[#allocation30_spill] sm:$0xff] %v2996_v23 }
  0xca   :  { %3339 = vst [vmem:[#allocation31_spill] sm:$0xff] %v2999_v31 }
  0xcb   :  { %3340 = vst [vmem:[#allocation32_spill] sm:$0xff] %v3002_v34 }
  0xcd   :  { %v317_v40 = vpop.f32.mrf.mxu2 }
  0xce   :  { %v346_v53 = vpop.f32.mrf.mxu3  ;;  %v3005_v19 = vadd.f32 %v317_v40, %v2975_v61  ;;  %v261_v1 = vpop.f32.mrf.mxu0 }
  0xcf   :  { %v3008_v0 = vadd.f32 %v346_v53, %v2977_v62  ;;  %v285_v8 = vpop.f32.mrf.mxu1  ;;  %v3011_v16 = vadd.f32 %v261_v1, %v2947_v35 }
  0xd0   :  { %3341 = vst [vmem:[#allocation33_spill] sm:$0xff] %v3005_v19  ;;  %v3014_v20 = vadd.f32 %v285_v8, %v2990_v15 }
  0xd1   :  { %3342 = vst [vmem:[#allocation34_spill] sm:$0xff] %v3008_v0 }
  0xd2   :  { %3343 = vst [vmem:[#allocation35_spill] sm:$0xff] %v3011_v16 }
  0xd3   :  { %3344 = vst [vmem:[#allocation36_spill] sm:$0xff] %v3014_v20 }
  0xd5   :  { %v319_v47 = vpop.f32.mrf.mxu2 }
  0xd6   :  { %v348_v41 = vpop.f32.mrf.mxu3  ;;  %v3020_v40 = vadd.f32 %v319_v47, %v2975_v61  ;;  %v448_v0 = vpop.f32.mrf.mxu0 }
  0xd7   :  { %v3023_v53 = vadd.f32 %v348_v41, %v2977_v62  ;;  %v288_v19 = vpop.f32.mrf.mxu1  ;;  %v449_v8 = vadd.f32 %v448_v0, %v398_v29 }
  0xd8   :  { %3345 = vst [vmem:[#allocation37_spill] sm:$0xff] %v3020_v40  ;;  %v3026_v1 = vadd.f32 %v288_v19, %v2990_v15  ;;  %v279_v19 = vadd.f32 %v278_v55, %v2990_v15  ;;  %v250_v55 = vadd.f32 %v2951_v36, %v2947_v35 }
  0xd9   :  { %3346 = vst [vmem:[#allocation38_spill] sm:$0xff] %v3023_v53  ;;  %v2017_v16 = vmul.f32 -1.442695, %v449_v8 }
  0xda   :  { %3347 = vst [vmem:[#allocation39_spill] sm:$0xff] %v3026_v1 }
  0xdb   :  { %2317 = vpow2.f32 %v2017_v16 }
  0xdd   :  { %v322_v31 = vpop.f32.mrf.mxu2 }
  0xde   :  { %v351_v21 = vpop.f32.mrf.mxu3  ;;  %v3029_v23 = vadd.f32 %v322_v31, %v2975_v61  ;;  %v450_v40 = vpop.f32.mrf.mxu0 }
  0xdf   :  { %v3032_v12 = vadd.f32 %v351_v21, %v2977_v62  ;;  %v290_v47 = vpop.f32.mrf.mxu1 }
  0xe0   :  { %3348 = vst [vmem:[#allocation40_spill] sm:$0xff] %v3029_v23  ;;  %v3035_v41 = vadd.f32 %v290_v47, %v2990_v15 }
  0xe1   :  { %3349 = vst [vmem:[#allocation41_spill] sm:$0xff] %v3032_v12  ;;  %v2318_v53 = vpop.eup %2317 }
  0xe2   :  { %3350 = vst [vmem:[#allocation42_spill] sm:$0xff] %v3035_v41  ;;  %v481_v20 = vadd.f32 1.0, %v2318_v53  ;;  %v400_v53 = vperm.slane %v396_v25, 3 }
  0xe4   :  { %2319 = vrcp.f32 %v481_v20  ;;  %vm487_vm1 = vweird.f32 %v481_v20 }
  0xe5   :  { %v324_v0 = vpop.f32.mrf.mxu2 }
  0xe6   :  { %v353_v16 = vpop.f32.mrf.mxu3  ;;  %v3039_v29 = vadd.f32 %v324_v0, %v2975_v61  ;;  %v741_v8 = vpop.f32.mrf.mxu0 }
  0xe7   :  { %v3042_v31 = vadd.f32 %v353_v16, %v2977_v62  ;;  %v293_v21 = vpop.f32.mrf.mxu1  ;;  %v772_v47 = vadd.f32 %v741_v8, %v279_v19 }
  0xe8   :  { %3351 = vst [vmem:[#allocation43_spill] sm:$0xff] %v3039_v29  ;;  %v3045_v40 = vadd.f32 %v293_v21, %v2990_v15 }
  0xe9   :  { %3352 = vst [vmem:[#allocation44_spill] sm:$0xff] %v3042_v31  ;;  %v2148_v23 = vmul.f32 -1.442695, %v772_v47 }
  0xea   :  { %3353 = vst [vmem:[#allocation45_spill] sm:$0xff] %v3045_v40  ;;  %v2320_v12 = vpop.eup %2319 }
  0xeb   :  { %2321 = vpow2.f32 %v2148_v23  ;;  %v483_v41 = vmul.f32 %v2320_v12, %v481_v20  ;;  %v399_v23 = vperm.slane %v396_v25, 2  ;;  %vm488_vm2 = vweird.f32 %v2320_v12 }
  0xec   :  { %v491_v25 = vand.u32 2147483647, %v481_v20  ;;  %vm489_vm3 = vmor %vm487_vm1, %vm488_vm2 }
  0xed   :  { %v474_v1 = vpop.f32.mrf.mxu2  ;;  %v484_v21 = vsub.f32 1.0, %v483_v41 }
  0xee   :  { %v728_v0 = vpop.f32.mrf.mxu3  ;;  %v475_v29 = vadd.f32 %v474_v1, %v400_v53  ;;  %v743_v31 = vpop.f32.mrf.mxu0  ;;  %vm492_vm4 = vcmp.eq.f32.partialorder %v491_v25, 8.507059e+37 }
  0xef   :  { %v771_v5 = vadd.f32 %v728_v0, %v250_v55  ;;  %v295_v16 = vpop.f32.mrf.mxu1  ;;  %v485_v36 = vmul.f32 %v2320_v12, %v484_v21  ;;  %v493_v31 = vand.u32 2147483648, %v481_v20 }
  0xf0   :  { %v3050_v7 = vadd.f32 %v295_v16, %v2990_v15  ;;  %v2018_v40 = vmul.f32 -1.442695, %v475_v29 }
  0xf1   :  { %v2147_v19 = vmul.f32 -1.442695, %v771_v5  ;;  %v2322_v8 = vpop.eup %2321  ;;  %v486_v16 = vadd.f32 %v2320_v12, %v485_v36 }
  0xf2   :  { %3354 = vst [vmem:[#allocation46_spill] sm:$0xff] %v3050_v7  ;;  %v3052_v47 = vadd.f32 1.0, %v2322_v8  ;;  %2323 = vpow2.f32 %v2018_v40 }
  0xf3   :  { %2325 = vpow2.f32 %v2147_v19  ;;  %v337_v19 = vadd.f32 %v2960_v45, %v2977_v62  ;;  %v490_v8 = vsel %vm489_vm3, %v2320_v12, %v486_v16  ;;  %v308_v45 = vadd.f32 %v2958_v43, %v2975_v61 }
  0xf4   :  { %2327 = vrcp.f32 %v3052_v47  ;;  %vm803_vm5 = vweird.f32 %v3052_v47  ;;  %v809_v12 = vand.u32 2147483648, %v3052_v47 }
  0xf5   :  { %v476_v58 = vpop.f32.mrf.mxu2 }
  0xf6   :  { %v730_v1 = vpop.f32.mrf.mxu3  ;;  %v494_v58 = vor.u32 1.1754944e-38, %v493_v31 }
  0xf7   :  { %v461_v53 = vpop.f32.mrf.mxu1 }
  0xf8   :  { %v462_v55 = vadd.f32 %v461_v53, %v399_v23  ;;  %v2324_v0 = vpop.eup %2323 }
  0xf9   :  { %v2326_v41 = vpop.eup %2325  ;;  %v501_v5 = vadd.f32 1.0, %v2324_v0  ;;  %v495_v0 = vsel %vm492_vm4, %v494_v58, %v490_v8 }
  0xfa   :  { %2329 = vtanh.f32 %v462_v55  ;;  %v3055_v29 = vpop.eup %2327  ;;  %v3057_v40 = vadd.f32 1.0, %v2326_v41 }
  0xfb   :  { %v799_v21 = vmul.f32 %v3055_v29, %v3052_v47  ;;  %2331 = vrcp.f32 %v501_v5  ;;  %v511_v25 = vand.u32 2147483647, %v501_v5  ;;  %vm804_vm6 = vweird.f32 %v3055_v29 }
  0xfc   :  { %2333 = vrcp.f32 %v3057_v40  ;;  %vm507_vm8 = vweird.f32 %v501_v5  ;;  %vm784_vm9 = vweird.f32 %v3057_v40  ;;  %vm3077_vm11 = vmor %vm803_vm5, %vm804_vm6 }
  0xfd   :  { %v767_v23 = vpop.f32.mrf.mxu2  ;;  %v800_v36 = vsub.f32 1.0, %v799_v21  ;;  %v513_v21 = vand.u32 2147483648, %v501_v5  ;;  %vm512_vm13 = vcmp.eq.f32.partialorder %v511_v25, 8.507059e+37 }
  0xfe   :  { %v774_v1 = vadd.f32 %v767_v23, %v337_v19 }
  0xff   :  { %v463_v53 = vpop.f32.mrf.mxu1  ;;  %v801_v49 = vmul.f32 %v3055_v29, %v800_v36 }
 0x100   :  { %v2330_v55 = vpop.eup %2329  ;;  %v2149_v41 = vmul.f32 -1.442695, %v774_v1  ;;  %v807_v53 = vand.u32 2147483647, %v3052_v47  ;;  %v810_v47 = vor.u32 1.1754944e-38, %v809_v12 }
 0x101   :  { %v517_v20 = vmul.f32 %v2330_v55, %v495_v0  ;;  %v2332_v7 = vpop.eup %2331  ;;  %v802_v36 = vadd.f32 %v3055_v29, %v801_v49  ;;  %v788_v55 = vand.u32 2147483647, %v3057_v40  ;;  %v514_v49 = vor.u32 1.1754944e-38, %v513_v21 }
 0x102   :  { %v2334_v34 = vpop.eup %2333  ;;  %v503_v31 = vmul.f32 %v2332_v7, %v501_v5  ;;  %2335 = vpow2.f32 %v2149_v41  ;;  %vm508_vm7 = vweird.f32 %v2332_v7  ;;  %v790_v41 = vand.u32 2147483648, %v3057_v40 }
 0x103   :  { %v780_v52 = vmul.f32 %v2334_v34, %v3057_v40  ;;  %2337 = vtanh.f32 %v517_v20  ;;  %vm785_vm10 = vweird.f32 %v2334_v34  ;;  %vm509_vm12 = vmor %vm507_vm8, %vm508_vm7  ;;  %vm808_vm15 = vcmp.eq.f32.partialorder %v807_v53, 8.507059e+37 }
 0x104   :  { %v504_v16 = vsub.f32 1.0, %v503_v31  ;;  %vm786_vm14 = vmor %vm784_vm9, %vm785_vm10  ;;  %vm789_vm0 = vcmp.eq.f32.partialorder %v788_v55, 8.507059e+37 }
 0x105   :  { %v781_v58 = vsub.f32 1.0, %v780_v52  ;;  %v769_v19 = vpop.f32.mrf.mxu2 }
 0x106   :  { %v505_v8 = vmul.f32 %v2332_v7, %v504_v16 }
 0x107   :  { %v754_v23 = vpop.f32.mrf.mxu1  ;;  %v782_v43 = vmul.f32 %v2334_v34, %v781_v58 }
 0x108   :  { %v773_v1 = vadd.f32 %v754_v23, %v308_v45  ;;  %v506_v0 = vadd.f32 %v2332_v7, %v505_v8  ;;  %v2336_v20 = vpop.eup %2335  ;;  %v806_v45 = vsel %vm3077_vm11, %v3055_v29, %v802_v36  ;;  %v791_v8 = vor.u32 1.1754944e-38, %v790_v41 }
 0x109   :  { %v783_v5 = vadd.f32 %v2334_v34, %v782_v43  ;;  %v817_v31 = vadd.f32 1.0, %v2336_v20  ;;  %v2338_v19 = vpop.eup %2337  ;;  %v811_v23 = vsel %vm808_vm15, %v810_v47, %v806_v45 }
 0x10a   :  { %2339 = vtanh.f32 %v773_v1  ;;  %v510_v16 = vsel %vm509_vm12, %v2332_v7, %v506_v0  ;;  %v833_v7 = vmul.f32 0.0, %v811_v23  ;;  %v252_v23 = vadd.f32 %v2962_v46, %v2947_v35 }
 0x10b   :  { %v515_v58 = vsel %vm512_vm13, %v514_v49, %v510_v16  ;;  %2341 = vrcp.f32 %v817_v31  ;;  %v787_v21 = vsel %vm786_vm14, %v2334_v34, %v783_v5  ;;  %v829_v20 = vand.u32 2147483648, %v817_v31 }
 0x10c   :  { %v3088_v1 = vmul.f32 %v2338_v19, %v515_v58  ;;  %v792_v29 = vsel %vm789_vm0, %v791_v8, %v787_v21  ;;  %v827_v53 = vand.u32 2147483647, %v817_v31  ;;  %vm823_vm2 = vweird.f32 %v817_v31 }
 0x10d   :  { %v830_v55 = vor.u32 1.1754944e-38, %v829_v20 }
 0x10e   :  { %vm828_vm4 = vcmp.eq.f32.partialorder %v827_v53, 8.507059e+37 }
 0x10f   :  { %v756_v43 = vpop.f32.mrf.mxu1 }
 0x110   :  { %v2340_v52 = vpop.eup %2339  ;;  %v3357_v43 = vld [vmem:[#allocation24_spill] sm:$0xff] }
 0x111   :  { %v834_v25 = vmul.f32 %v2340_v52, %v792_v29  ;;  %v2342_v12 = vpop.eup %2341  ;;  %v339_v52 = vadd.f32 %v3357_v43, %v2977_v62 }
 0x112   :  { %v819_v40 = vmul.f32 %v2342_v12, %v817_v31  ;;  %vm824_vm1 = vweird.f32 %v2342_v12  ;;  %v281_v31 = vadd.f32 %v2985_v9, %v2990_v15 }
 0x113   :  { %v3090_v36 = vadd.f32 %v834_v25, %v833_v7  ;;  %vm825_vm3 = vmor %vm823_vm2, %vm824_vm1 }
 0x114   :  { %v820_v0 = vsub.f32 1.0, %v819_v40 }
 0x115   :  { %2343 = vtanh.f32 %v3090_v36 }
 0x116   :  { %v821_v34 = vmul.f32 %v2342_v12, %v820_v0 }
 0x118   :  { %v822_v49 = vadd.f32 %v2342_v12, %v821_v34 }
 0x11a   :  { %v826_v41 = vsel %vm825_vm3, %v2342_v12, %v822_v49 }
 0x11b   :  { %v2344_v5 = vpop.eup %2343  ;;  %v831_v45 = vsel %vm828_vm4, %v830_v55, %v826_v41 }
 0x11c   :  { %v837_v16 = vmul.f32 %v2344_v5, %v831_v45 }
 0x11e   :  { %v845_v47 = vpack.c.bf16 %v837_v16, %v837_v16 }
 0x120   :  { %854 = vmatmul.bf16.vlgmr.msra.gmra.mxu3 %v845_v47  ;;  %867 = vmatmul.bf16.vlgmr.msrb.gmra.mxu0 %v845_v47 }
 0x121   :  { %880 = vmatmul.bf16.vlgmr.msra.gmra.mxu1 %v845_v47  ;;  %893 = vmatmul.bf16.vlgmr.msrb.gmra.mxu2 %v845_v47  ;;  %v3358_v47 = vld [vmem:[#allocation23_spill] sm:$0xff] }
 0x122   :  { %1100 = vmatpush.bf16.msra.mxu3 %v2760_v32  ;;  %1113 = vmatpush.bf16.msrb.mxu0 %v2773_v51 }
 0x123   :  { %1126 = vmatpush.bf16.msra.mxu1 %v2840_v48  ;;  %1139 = vmatpush.bf16.msrb.mxu2 %v2803_v13 }
 0x126   :  { %1101 = vmatpush.bf16.msra.mxu3 %v2771_v42  ;;  %1114 = vmatpush.bf16.msrb.mxu0 %v2779_v57 }
 0x127   :  { %1127 = vmatpush.bf16.msra.mxu1 %v2847_v56  ;;  %1140 = vmatpush.bf16.msrb.mxu2 %v2812_v24 }
 0x12a   :  { %1102 = vmatpush.bf16.msra.mxu3 %v2776_v54  ;;  %1115 = vmatpush.bf16.msrb.mxu0 %v2785_v63 }
 0x12b   :  { %1128 = vmatpush.bf16.msra.mxu1 %v2855_v2  ;;  %1141 = vmatpush.bf16.msrb.mxu2 %v2821_v30 }
 0x12e   :  { %1103 = vmatpush.bf16.msra.mxu3 %v2782_v60  ;;  %1116 = vmatpush.bf16.msrb.mxu0 %v2793_v6 }
 0x12f   :  { %1129 = vmatpush.bf16.msra.mxu1 %v2862_v10  ;;  %1142 = vmatpush.bf16.msrb.mxu2 %v2830_v39 }
 0x132   :  { %1104 = vmatpush.bf16.msra.mxu3 %v2790_v3  ;;  %1117 = vmatpush.bf16.msrb.mxu0 %v2809_v18 }
 0x133   :  { %1130 = vmatpush.bf16.msra.mxu1 %v2873_v17  ;;  %1143 = vmatpush.bf16.msrb.mxu2 %v2844_v50 }
 0x136   :  { %1105 = vmatpush.bf16.msra.mxu3 %v2806_v14  ;;  %1118 = vmatpush.bf16.msrb.mxu0 %v2818_v28 }
 0x137   :  { %1131 = vmatpush.bf16.msra.mxu1 %v2880_v22  ;;  %1144 = vmatpush.bf16.msrb.mxu2 %v2852_v59 }
 0x13a   :  { %1106 = vmatpush.bf16.msra.mxu3 %v2815_v27  ;;  %1119 = vmatpush.bf16.msrb.mxu0 %v2827_v38 }
 0x13b   :  { %1132 = vmatpush.bf16.msra.mxu1 %v2885_v26  ;;  %1145 = vmatpush.bf16.msrb.mxu2 %v2859_v4 }
 0x13e   :  { %1107 = vmatpush.bf16.msra.mxu3 %v2824_v37  ;;  %1120 = vmatpush.bf16.msrb.mxu0 %v2834_v44 }
 0x13f   :  { %1133 = vmatpush.bf16.msra.mxu1 %v2890_v33  ;;  %1146 = vmatpush.bf16.msrb.mxu2 %v2866_v11 }
 0x19d   :  { %v868_v58 = vpop.f32.mrf.mxu0 }
 0x19e   :  { %v899_v19 = vadd.f32 %v868_v58, %v281_v31  ;;  %v881_v21 = vpop.f32.mrf.mxu1  ;;  %v310_v31 = vadd.f32 %v3358_v47, %v2975_v61 }
 0x1a0   :  { %v2151_v8 = vmul.f32 -1.442695, %v899_v19 }
 0x1a2   :  { %2345 = vpow2.f32 %v2151_v8  ;;  %v900_v8 = vadd.f32 %v881_v21, %v310_v31 }
 0x1a3   :  { %v855_v29 = vpop.f32.mrf.mxu3 }
 0x1a4   :  { %v898_v7 = vadd.f32 %v855_v29, %v252_v23  ;;  %v894_v25 = vpop.f32.mrf.mxu2 }
 0x1a5   :  { %v901_v12 = vadd.f32 %v894_v25, %v339_v52  ;;  %v870_v40 = vpop.f32.mrf.mxu0 }
 0x1a6   :  { %v2150_v0 = vmul.f32 -1.442695, %v898_v7  ;;  %v883_v20 = vpop.f32.mrf.mxu1 }
 0x1a7   :  { %v2152_v34 = vmul.f32 -1.442695, %v901_v12 }
 0x1a8   :  { %v2346_v9 = vpop.eup %2345  ;;  %2347 = vpow2.f32 %v2150_v0 }
 0x1a9   :  { %v924_v15 = vadd.f32 1.0, %v2346_v9  ;;  %2349 = vpow2.f32 %v2152_v34 }
 0x1ab   :  { %2351 = vrcp.f32 %v924_v15  ;;  %v857_v53 = vpop.f32.mrf.mxu3  ;;  %v936_v29 = vand.u32 2147483648, %v924_v15  ;;  %vm930_vm6 = vweird.f32 %v924_v15  ;;  %v934_v25 = vand.u32 2147483647, %v924_v15 }
 0x1ac   :  { %v896_v49 = vpop.f32.mrf.mxu2 }
 0x1ad   :  { %v937_v61 = vor.u32 1.1754944e-38, %v936_v29  ;;  %vm935_vm9 = vcmp.eq.f32.partialorder %v934_v25, 8.507059e+37 }
 0x1ae   :  { %v2348_v46 = vpop.eup %2347 }
 0x1af   :  { %v2350_v5 = vpop.eup %2349  ;;  %v905_v55 = vadd.f32 1.0, %v2348_v46 }
 0x1b0   :  { %v944_v41 = vadd.f32 1.0, %v2350_v5 }
 0x1b1   :  { %v2352_v62 = vpop.eup %2351  ;;  %2353 = vrcp.f32 %v905_v55  ;;  %v917_v40 = vand.u32 2147483648, %v905_v55  ;;  %v915_v34 = vand.u32 2147483647, %v905_v55  ;;  %vm911_vm10 = vweird.f32 %v905_v55 }
 0x1b2   :  { %v926_v45 = vmul.f32 %v2352_v62, %v924_v15  ;;  %2355 = vrcp.f32 %v944_v41  ;;  %vm931_vm5 = vweird.f32 %v2352_v62  ;;  %vm950_vm14 = vweird.f32 %v944_v41 }
 0x1b3   :  { %vm932_vm7 = vmor %vm930_vm6, %vm931_vm5  ;;  %2357 = vtanh.f32 %v900_v8  ;;  %v918_v49 = vor.u32 1.1754944e-38, %v917_v40  ;;  %vm916_vm12 = vcmp.eq.f32.partialorder %v915_v34, 8.507059e+37 }
 0x1b4   :  { %v927_v16 = vsub.f32 1.0, %v926_v45 }
 0x1b6   :  { %v928_v58 = vmul.f32 %v2352_v62, %v927_v16 }
 0x1b7   :  { %v2354_v19 = vpop.eup %2353 }
 0x1b8   :  { %v2356_v23 = vpop.eup %2355  ;;  %v929_v43 = vadd.f32 %v2352_v62, %v928_v58  ;;  %v907_v52 = vmul.f32 %v2354_v19, %v905_v55  ;;  %vm912_vm8 = vweird.f32 %v2354_v19  ;;  %v956_v58 = vand.u32 2147483648, %v944_v41 }
 0x1b9   :  { %v946_v7 = vmul.f32 %v2356_v23, %v944_v41  ;;  %vm913_vm11 = vmor %vm911_vm10, %vm912_vm8  ;;  %v2358_v5 = vpop.eup %2357  ;;  %vm951_vm13 = vweird.f32 %v2356_v23  ;;  %v954_v55 = vand.u32 2147483647, %v944_v41  ;;  %v3359_v41 = vld [vmem:[#allocation32_spill] sm:$0xff] }
 0x1ba   :  { %v908_v12 = vsub.f32 1.0, %v907_v52  ;;  %v933_v0 = vsel %vm932_vm7, %v2352_v62, %v929_v43  ;;  %vm952_vm15 = vmor %vm950_vm14, %vm951_vm13  ;;  %v957_v43 = vor.u32 1.1754944e-38, %v956_v58 }
 0x1bb   :  { %v947_v9 = vsub.f32 1.0, %v946_v7  ;;  %v938_v53 = vsel %vm935_vm9, %v937_v61, %v933_v0  ;;  %vm955_vm0 = vcmp.eq.f32.partialorder %v954_v55, 8.507059e+37  ;;  %v3360_v0 = vld [vmem:[#allocation25_spill] sm:$0xff]  ;;  %v3361_v61 = vld [vmem:[#allocation27_spill] sm:$0xff] }
 0x1bc   :  { %v909_v20 = vmul.f32 %v2354_v19, %v908_v12  ;;  %v960_v16 = vmul.f32 %v938_v53, %v3090_v36 }
 0x1bd   :  { %v948_v45 = vmul.f32 %v2356_v23, %v947_v9 }
 0x1be   :  { %v910_v21 = vadd.f32 %v2354_v19, %v909_v20 }
 0x1bf   :  { %v949_v31 = vadd.f32 %v2356_v23, %v948_v45 }
 0x1c0   :  { %v914_v46 = vsel %vm913_vm11, %v2354_v19, %v910_v21 }
 0x1c1   :  { %v919_v15 = vsel %vm916_vm12, %v918_v49, %v914_v46  ;;  %v953_v8 = vsel %vm952_vm15, %v2356_v23, %v949_v31 }
 0x1c2   :  { %v961_v47 = vmul.f32 %v2358_v5, %v919_v15  ;;  %v958_v52 = vsel %vm955_vm0, %v957_v43, %v953_v8 }
 0x1c4   :  { %v3134_v62 = vadd.f32 %v961_v47, %v960_v16 }
 0x1c6   :  { %2359 = vtanh.f32 %v3134_v62 }
 0x1cc   :  { %v2360_v19 = vpop.eup %2359 }
 0x1cd   :  { %v964_v29 = vmul.f32 %v2360_v19, %v958_v52 }
 0x1cf   :  { %v972_v7 = vpack.c.bf16 %v964_v29, %v964_v29 }
 0x1d1   :  { %981 = vmatmul.bf16.vlgmr.msrb.gmra.mxu3 %v972_v7  ;;  %994 = vmatmul.bf16.vlgmr.msra.gmra.mxu0 %v972_v7 }
 0x1d2   :  { %1007 = vmatmul.bf16.vlgmr.msrb.gmra.mxu1 %v972_v7  ;;  %1020 = vmatmul.bf16.vlgmr.msra.gmra.mxu2 %v972_v7  ;;  %v3362_v7 = vld [vmem:[#allocation26_spill] sm:$0xff] }
 0x1d3   :  { %1227 = vmatpush.bf16.msrb.mxu3 %v2760_v32  ;;  %1240 = vmatpush.bf16.msra.mxu0 %v2773_v51 }
 0x1d4   :  { %1253 = vmatpush.bf16.msrb.mxu1 %v2840_v48  ;;  %1266 = vmatpush.bf16.msra.mxu2 %v2803_v13 }
 0x1d7   :  { %1228 = vmatpush.bf16.msrb.mxu3 %v2771_v42  ;;  %1241 = vmatpush.bf16.msra.mxu0 %v2779_v57 }
 0x1d8   :  { %1254 = vmatpush.bf16.msrb.mxu1 %v2847_v56  ;;  %1267 = vmatpush.bf16.msra.mxu2 %v2812_v24 }
 0x1db   :  { %1229 = vmatpush.bf16.msrb.mxu3 %v2776_v54  ;;  %1242 = vmatpush.bf16.msra.mxu0 %v2785_v63 }
 0x1dc   :  { %1255 = vmatpush.bf16.msrb.mxu1 %v2855_v2  ;;  %1268 = vmatpush.bf16.msra.mxu2 %v2821_v30 }
 0x1df   :  { %1230 = vmatpush.bf16.msrb.mxu3 %v2782_v60  ;;  %1243 = vmatpush.bf16.msra.mxu0 %v2793_v6 }
 0x1e0   :  { %1256 = vmatpush.bf16.msrb.mxu1 %v2862_v10  ;;  %1269 = vmatpush.bf16.msra.mxu2 %v2830_v39 }
 0x1e3   :  { %1231 = vmatpush.bf16.msrb.mxu3 %v2790_v3  ;;  %1244 = vmatpush.bf16.msra.mxu0 %v2809_v18 }
 0x1e4   :  { %1257 = vmatpush.bf16.msrb.mxu1 %v2873_v17  ;;  %1270 = vmatpush.bf16.msra.mxu2 %v2844_v50 }
 0x1e7   :  { %1232 = vmatpush.bf16.msrb.mxu3 %v2806_v14  ;;  %1245 = vmatpush.bf16.msra.mxu0 %v2818_v28 }
 0x1e8   :  { %1258 = vmatpush.bf16.msrb.mxu1 %v2880_v22  ;;  %1271 = vmatpush.bf16.msra.mxu2 %v2852_v59 }
 0x1eb   :  { %1233 = vmatpush.bf16.msrb.mxu3 %v2815_v27  ;;  %1246 = vmatpush.bf16.msra.mxu0 %v2827_v38 }
 0x1ec   :  { %1259 = vmatpush.bf16.msrb.mxu1 %v2885_v26  ;;  %1272 = vmatpush.bf16.msra.mxu2 %v2859_v4 }
 0x1ef   :  { %1234 = vmatpush.bf16.msrb.mxu3 %v2824_v37  ;;  %1247 = vmatpush.bf16.msra.mxu0 %v2834_v44 }
 0x1f0   :  { %1260 = vmatpush.bf16.msrb.mxu1 %v2890_v33  ;;  %1273 = vmatpush.bf16.msra.mxu2 %v2866_v11 }
 0x24e   :  { %v995_v36 = vpop.f32.mrf.mxu0 }
 0x24f   :  { %v1026_v23 = vadd.f32 %v995_v36, %v3359_v41  ;;  %v1008_v25 = vpop.f32.mrf.mxu1 }
 0x250   :  { %v1027_v36 = vadd.f32 %v1008_v25, %v3362_v7 }
 0x251   :  { %v2154_v12 = vmul.f32 -1.442695, %v1026_v23 }
 0x253   :  { %2361 = vpow2.f32 %v2154_v12 }
 0x254   :  { %v982_v40 = vpop.f32.mrf.mxu3 }
 0x255   :  { %v1025_v20 = vadd.f32 %v982_v40, %v3360_v0  ;;  %v1021_v34 = vpop.f32.mrf.mxu2 }
 0x256   :  { %v1028_v9 = vadd.f32 %v1021_v34, %v3361_v61  ;;  %v997_v21 = vpop.f32.mrf.mxu0 }
 0x257   :  { %v2153_v53 = vmul.f32 -1.442695, %v1025_v20  ;;  %v1010_v49 = vpop.f32.mrf.mxu1 }
 0x258   :  { %v2155_v46 = vmul.f32 -1.442695, %v1028_v9 }
 0x259   :  { %v2362_v5 = vpop.eup %2361  ;;  %2363 = vpow2.f32 %v2153_v53 }
 0x25a   :  { %v1051_v15 = vadd.f32 1.0, %v2362_v5  ;;  %2365 = vpow2.f32 %v2155_v46 }
 0x25c   :  { %2367 = vrcp.f32 %v1051_v15  ;;  %v984_v45 = vpop.f32.mrf.mxu3  ;;  %v1063_v40 = vand.u32 2147483648, %v1051_v15  ;;  %vm1057_vm2 = vweird.f32 %v1051_v15  ;;  %v1061_v20 = vand.u32 2147483647, %v1051_v15 }
 0x25d   :  { %v1023_v16 = vpop.f32.mrf.mxu2 }
 0x25e   :  { %v1064_v49 = vor.u32 1.1754944e-38, %v1063_v40  ;;  %vm1062_vm5 = vcmp.eq.f32.partialorder %v1061_v20, 8.507059e+37 }
 0x25f   :  { %v2364_v47 = vpop.eup %2363 }
 0x260   :  { %v2366_v31 = vpop.eup %2365  ;;  %v1032_v58 = vadd.f32 1.0, %v2364_v47 }
 0x261   :  { %v1071_v55 = vadd.f32 1.0, %v2366_v31 }
 0x262   :  { %v2368_v8 = vpop.eup %2367  ;;  %2369 = vrcp.f32 %v1032_v58  ;;  %v1044_v61 = vand.u32 2147483648, %v1032_v58  ;;  %v1042_v53 = vand.u32 2147483647, %v1032_v58  ;;  %vm1038_vm6 = vweird.f32 %v1032_v58 }
 0x263   :  { %v1053_v43 = vmul.f32 %v2368_v8, %v1051_v15  ;;  %2371 = vrcp.f32 %v1071_v55  ;;  %vm1058_vm1 = vweird.f32 %v2368_v8  ;;  %v1083_v7 = vand.u32 2147483648, %v1071_v55 }
 0x264   :  { %vm1059_vm3 = vmor %vm1057_vm2, %vm1058_vm1  ;;  %2373 = vtanh.f32 %v1027_v36  ;;  %v1045_v45 = vor.u32 1.1754944e-38, %v1044_v61  ;;  %vm1043_vm8 = vcmp.eq.f32.partialorder %v1042_v53, 8.507059e+37  ;;  %vm1077_vm10 = vweird.f32 %v1071_v55 }
 0x265   :  { %v1054_v19 = vsub.f32 1.0, %v1053_v43 }
 0x267   :  { %v1055_v52 = vmul.f32 %v2368_v8, %v1054_v19 }
 0x268   :  { %v2370_v29 = vpop.eup %2369 }
 0x269   :  { %v2372_v41 = vpop.eup %2371  ;;  %v1056_v23 = vadd.f32 %v2368_v8, %v1055_v52  ;;  %v1034_v12 = vmul.f32 %v2370_v29, %v1032_v58  ;;  %vm1039_vm4 = vweird.f32 %v2370_v29  ;;  %v1081_v58 = vand.u32 2147483647, %v1071_v55 }
 0x26a   :  { %v1073_v0 = vmul.f32 %v2372_v41, %v1071_v55  ;;  %vm1040_vm7 = vmor %vm1038_vm6, %vm1039_vm4  ;;  %v2374_v47 = vpop.eup %2373  ;;  %vm1078_vm9 = vweird.f32 %v2372_v41  ;;  %v3363_v55 = vld [vmem:[#allocation36_spill] sm:$0xff] }
 0x26b   :  { %v1035_v34 = vsub.f32 1.0, %v1034_v12  ;;  %v1060_v9 = vsel %vm1059_vm3, %v2368_v8, %v1056_v23  ;;  %vm1079_vm11 = vmor %vm1077_vm10, %vm1078_vm9  ;;  %v1084_v23 = vor.u32 1.1754944e-38, %v1083_v7  ;;  %vm1082_vm12 = vcmp.eq.f32.partialorder %v1081_v58, 8.507059e+37 }
 0x26c   :  { %v1074_v46 = vsub.f32 1.0, %v1073_v0  ;;  %v1065_v5 = vsel %vm1062_vm5, %v1064_v49, %v1060_v9  ;;  %v3364_v9 = vld [vmem:[#allocation28_spill] sm:$0xff]  ;;  %v3365_v49 = vld [vmem:[#allocation30_spill] sm:$0xff] }
 0x26d   :  { %v1036_v21 = vmul.f32 %v2370_v29, %v1035_v34  ;;  %v1087_v43 = vmul.f32 %v1065_v5, %v3134_v62 }
 0x26e   :  { %v1075_v31 = vmul.f32 %v2372_v41, %v1074_v46 }
 0x26f   :  { %v1037_v25 = vadd.f32 %v2370_v29, %v1036_v21 }
 0x270   :  { %v1076_v52 = vadd.f32 %v2372_v41, %v1075_v31 }
 0x271   :  { %v1041_v16 = vsel %vm1040_vm7, %v2370_v29, %v1037_v25 }
 0x272   :  { %v1046_v15 = vsel %vm1043_vm8, %v1045_v45, %v1041_v16  ;;  %v1080_v36 = vsel %vm1079_vm11, %v2372_v41, %v1076_v52 }
 0x273   :  { %v1088_v19 = vmul.f32 %v2374_v47, %v1046_v15  ;;  %v1085_v12 = vsel %vm1082_vm12, %v1084_v23, %v1080_v36 }
 0x275   :  { %v3174_v8 = vadd.f32 %v1088_v19, %v1087_v43 }
 0x277   :  { %2375 = vtanh.f32 %v3174_v8 }
 0x27d   :  { %v2376_v29 = vpop.eup %2375 }
 0x27e   :  { %v1091_v40 = vmul.f32 %v2376_v29, %v1085_v12 }
 0x280   :  { %v1099_v0 = vpack.c.bf16 %v1091_v40, %v1091_v40 }
 0x282   :  { %1108 = vmatmul.bf16.vlgmr.msra.gmra.mxu3 %v1099_v0  ;;  %1121 = vmatmul.bf16.vlgmr.msrb.gmra.mxu0 %v1099_v0 }
 0x283   :  { %1134 = vmatmul.bf16.vlgmr.msra.gmra.mxu1 %v1099_v0  ;;  %1147 = vmatmul.bf16.vlgmr.msrb.gmra.mxu2 %v1099_v0  ;;  %v3366_v0 = vld [vmem:[#allocation29_spill] sm:$0xff] }
 0x284   :  { %1354 = vmatpush.bf16.msra.mxu3 %v2760_v32  ;;  %1367 = vmatpush.bf16.msrb.mxu0 %v2773_v51 }
 0x285   :  { %1380 = vmatpush.bf16.msra.mxu1 %v2840_v48  ;;  %1393 = vmatpush.bf16.msrb.mxu2 %v2803_v13 }
 0x288   :  { %1355 = vmatpush.bf16.msra.mxu3 %v2771_v42  ;;  %1368 = vmatpush.bf16.msrb.mxu0 %v2779_v57 }
 0x289   :  { %1381 = vmatpush.bf16.msra.mxu1 %v2847_v56  ;;  %1394 = vmatpush.bf16.msrb.mxu2 %v2812_v24 }
 0x28c   :  { %1356 = vmatpush.bf16.msra.mxu3 %v2776_v54  ;;  %1369 = vmatpush.bf16.msrb.mxu0 %v2785_v63 }
 0x28d   :  { %1382 = vmatpush.bf16.msra.mxu1 %v2855_v2  ;;  %1395 = vmatpush.bf16.msrb.mxu2 %v2821_v30 }
 0x290   :  { %1357 = vmatpush.bf16.msra.mxu3 %v2782_v60  ;;  %1370 = vmatpush.bf16.msrb.mxu0 %v2793_v6 }
 0x291   :  { %1383 = vmatpush.bf16.msra.mxu1 %v2862_v10  ;;  %1396 = vmatpush.bf16.msrb.mxu2 %v2830_v39 }
 0x294   :  { %1358 = vmatpush.bf16.msra.mxu3 %v2790_v3  ;;  %1371 = vmatpush.bf16.msrb.mxu0 %v2809_v18 }
 0x295   :  { %1384 = vmatpush.bf16.msra.mxu1 %v2873_v17  ;;  %1397 = vmatpush.bf16.msrb.mxu2 %v2844_v50 }
 0x298   :  { %1359 = vmatpush.bf16.msra.mxu3 %v2806_v14  ;;  %1372 = vmatpush.bf16.msrb.mxu0 %v2818_v28 }
 0x299   :  { %1385 = vmatpush.bf16.msra.mxu1 %v2880_v22  ;;  %1398 = vmatpush.bf16.msrb.mxu2 %v2852_v59 }
 0x29c   :  { %1360 = vmatpush.bf16.msra.mxu3 %v2815_v27  ;;  %1373 = vmatpush.bf16.msrb.mxu0 %v2827_v38 }
 0x29d   :  { %1386 = vmatpush.bf16.msra.mxu1 %v2885_v26  ;;  %1399 = vmatpush.bf16.msrb.mxu2 %v2859_v4 }
 0x2a0   :  { %1361 = vmatpush.bf16.msra.mxu3 %v2824_v37  ;;  %1374 = vmatpush.bf16.msrb.mxu0 %v2834_v44 }
 0x2a1   :  { %1387 = vmatpush.bf16.msra.mxu1 %v2890_v33  ;;  %1400 = vmatpush.bf16.msrb.mxu2 %v2866_v11 }
 0x2ff   :  { %v1122_v62 = vpop.f32.mrf.mxu0 }
 0x300   :  { %v1153_v41 = vadd.f32 %v1122_v62, %v3363_v55  ;;  %v1135_v20 = vpop.f32.mrf.mxu1 }
 0x301   :  { %v1154_v62 = vadd.f32 %v1135_v20, %v3366_v0 }
 0x302   :  { %v2157_v34 = vmul.f32 -1.442695, %v1153_v41 }
 0x304   :  { %2377 = vpow2.f32 %v2157_v34 }
 0x305   :  { %v1109_v61 = vpop.f32.mrf.mxu3 }
 0x306   :  { %v1152_v21 = vadd.f32 %v1109_v61, %v3364_v9  ;;  %v1148_v53 = vpop.f32.mrf.mxu2 }
 0x307   :  { %v1155_v46 = vadd.f32 %v1148_v53, %v3365_v49  ;;  %v1124_v25 = vpop.f32.mrf.mxu0 }
 0x308   :  { %v2156_v5 = vmul.f32 -1.442695, %v1152_v21  ;;  %v1137_v45 = vpop.f32.mrf.mxu1 }
 0x309   :  { %v2158_v16 = vmul.f32 -1.442695, %v1155_v46 }
 0x30a   :  { %v2378_v47 = vpop.eup %2377  ;;  %2379 = vpow2.f32 %v2156_v5 }
 0x30b   :  { %v1178_v15 = vadd.f32 1.0, %v2378_v47  ;;  %2381 = vpow2.f32 %v2158_v16 }
 0x30d   :  { %2383 = vrcp.f32 %v1178_v15  ;;  %v1111_v31 = vpop.f32.mrf.mxu3  ;;  %v1190_v61 = vand.u32 2147483648, %v1178_v15  ;;  %vm1184_vm14 = vweird.f32 %v1178_v15  ;;  %v1188_v21 = vand.u32 2147483647, %v1178_v15 }
 0x30e   :  { %v1150_v43 = vpop.f32.mrf.mxu2 }
 0x30f   :  { %v1191_v45 = vor.u32 1.1754944e-38, %v1190_v61  ;;  %vm1189_vm1 = vcmp.eq.f32.partialorder %v1188_v21, 8.507059e+37 }
 0x310   :  { %v2380_v19 = vpop.eup %2379 }
 0x311   :  { %v2382_v52 = vpop.eup %2381  ;;  %v1159_v7 = vadd.f32 1.0, %v2380_v19 }
 0x312   :  { %v1198_v58 = vadd.f32 1.0, %v2382_v52 }
 0x313   :  { %v2384_v36 = vpop.eup %2383  ;;  %2385 = vrcp.f32 %v1159_v7  ;;  %v1171_v49 = vand.u32 2147483648, %v1159_v7  ;;  %v1169_v5 = vand.u32 2147483647, %v1159_v7  ;;  %vm1165_vm2 = vweird.f32 %v1159_v7 }
 0x314   :  { %v1180_v23 = vmul.f32 %v2384_v36, %v1178_v15  ;;  %2387 = vrcp.f32 %v1198_v58  ;;  %vm1185_vm13 = vweird.f32 %v2384_v36  ;;  %v1210_v0 = vand.u32 2147483648, %v1198_v58 }
 0x315   :  { %vm1186_vm15 = vmor %vm1184_vm14, %vm1185_vm13  ;;  %2389 = vtanh.f32 %v1154_v62  ;;  %v1172_v31 = vor.u32 1.1754944e-38, %v1171_v49  ;;  %vm1170_vm4 = vcmp.eq.f32.partialorder %v1169_v5, 8.507059e+37  ;;  %vm1204_vm6 = vweird.f32 %v1198_v58 }
 0x316   :  { %v1181_v29 = vsub.f32 1.0, %v1180_v23 }
 0x318   :  { %v1182_v12 = vmul.f32 %v2384_v36, %v1181_v29 }
 0x319   :  { %v2386_v40 = vpop.eup %2385 }
 0x31a   :  { %v2388_v55 = vpop.eup %2387  ;;  %v1183_v41 = vadd.f32 %v2384_v36, %v1182_v12  ;;  %v1161_v34 = vmul.f32 %v2386_v40, %v1159_v7  ;;  %vm1166_vm0 = vweird.f32 %v2386_v40  ;;  %v1208_v7 = vand.u32 2147483647, %v1198_v58 }
 0x31b   :  { %v1200_v9 = vmul.f32 %v2388_v55, %v1198_v58  ;;  %vm1167_vm3 = vmor %vm1165_vm2, %vm1166_vm0  ;;  %v2390_v19 = vpop.eup %2389  ;;  %vm1205_vm5 = vweird.f32 %v2388_v55  ;;  %v3367_v58 = vld [vmem:[#allocation39_spill] sm:$0xff] }
 0x31c   :  { %v1162_v53 = vsub.f32 1.0, %v1161_v34  ;;  %v1187_v46 = vsel %vm1186_vm15, %v2384_v36, %v1183_v41  ;;  %vm1206_vm7 = vmor %vm1204_vm6, %vm1205_vm5  ;;  %v1211_v41 = vor.u32 1.1754944e-38, %v1210_v0  ;;  %vm1209_vm8 = vcmp.eq.f32.partialorder %v1208_v7, 8.507059e+37 }
 0x31d   :  { %v1201_v16 = vsub.f32 1.0, %v1200_v9  ;;  %v1192_v47 = vsel %vm1189_vm1, %v1191_v45, %v1187_v46  ;;  %v3368_v46 = vld [vmem:[#allocation31_spill] sm:$0xff]  ;;  %v3369_v45 = vld [vmem:[#allocation34_spill] sm:$0xff] }
 0x31e   :  { %v1163_v25 = vmul.f32 %v2386_v40, %v1162_v53  ;;  %v1214_v23 = vmul.f32 %v1192_v47, %v3174_v8 }
 0x31f   :  { %v1202_v52 = vmul.f32 %v2388_v55, %v1201_v16 }
 0x320   :  { %v1164_v20 = vadd.f32 %v2386_v40, %v1163_v25 }
 0x321   :  { %v1203_v12 = vadd.f32 %v2388_v55, %v1202_v52 }
 0x322   :  { %v1168_v43 = vsel %vm1167_vm3, %v2386_v40, %v1164_v20 }
 0x323   :  { %v1173_v15 = vsel %vm1170_vm4, %v1172_v31, %v1168_v43  ;;  %v1207_v62 = vsel %vm1206_vm7, %v2388_v55, %v1203_v12 }
 0x324   :  { %v1215_v29 = vmul.f32 %v2390_v19, %v1173_v15  ;;  %v1212_v34 = vsel %vm1209_vm8, %v1211_v41, %v1207_v62 }
 0x326   :  { %v3214_v36 = vadd.f32 %v1215_v29, %v1214_v23 }
 0x328   :  { %2391 = vtanh.f32 %v3214_v36 }
 0x32e   :  { %v2392_v40 = vpop.eup %2391 }
 0x32f   :  { %v1218_v61 = vmul.f32 %v2392_v40, %v1212_v34 }
 0x331   :  { %v1226_v9 = vpack.c.bf16 %v1218_v61, %v1218_v61 }
 0x333   :  { %1235 = vmatmul.bf16.vlgmr.msrb.gmra.mxu3 %v1226_v9  ;;  %1248 = vmatmul.bf16.vlgmr.msra.gmra.mxu0 %v1226_v9 }
 0x334   :  { %1261 = vmatmul.bf16.vlgmr.msrb.gmra.mxu1 %v1226_v9  ;;  %1274 = vmatmul.bf16.vlgmr.msra.gmra.mxu2 %v1226_v9  ;;  %v3370_v9 = vld [vmem:[#allocation33_spill] sm:$0xff] }
 0x335   :  { %1481 = vmatpush.bf16.msrb.mxu3 %v2760_v32  ;;  %1494 = vmatpush.bf16.msra.mxu0 %v2773_v51 }
 0x336   :  { %1507 = vmatpush.bf16.msrb.mxu1 %v2840_v48  ;;  %1520 = vmatpush.bf16.msra.mxu2 %v2803_v13 }
 0x339   :  { %1482 = vmatpush.bf16.msrb.mxu3 %v2771_v42  ;;  %1495 = vmatpush.bf16.msra.mxu0 %v2779_v57 }
 0x33a   :  { %1508 = vmatpush.bf16.msrb.mxu1 %v2847_v56  ;;  %1521 = vmatpush.bf16.msra.mxu2 %v2812_v24 }
 0x33d   :  { %1483 = vmatpush.bf16.msrb.mxu3 %v2776_v54  ;;  %1496 = vmatpush.bf16.msra.mxu0 %v2785_v63 }
 0x33e   :  { %1509 = vmatpush.bf16.msrb.mxu1 %v2855_v2  ;;  %1522 = vmatpush.bf16.msra.mxu2 %v2821_v30 }
 0x341   :  { %1484 = vmatpush.bf16.msrb.mxu3 %v2782_v60  ;;  %1497 = vmatpush.bf16.msra.mxu0 %v2793_v6 }
 0x342   :  { %1510 = vmatpush.bf16.msrb.mxu1 %v2862_v10  ;;  %1523 = vmatpush.bf16.msra.mxu2 %v2830_v39 }
 0x345   :  { %1485 = vmatpush.bf16.msrb.mxu3 %v2790_v3  ;;  %1498 = vmatpush.bf16.msra.mxu0 %v2809_v18 }
 0x346   :  { %1511 = vmatpush.bf16.msrb.mxu1 %v2873_v17  ;;  %1524 = vmatpush.bf16.msra.mxu2 %v2844_v50 }
 0x349   :  { %1486 = vmatpush.bf16.msrb.mxu3 %v2806_v14  ;;  %1499 = vmatpush.bf16.msra.mxu0 %v2818_v28 }
 0x34a   :  { %1512 = vmatpush.bf16.msrb.mxu1 %v2880_v22  ;;  %1525 = vmatpush.bf16.msra.mxu2 %v2852_v59 }
 0x34d   :  { %1487 = vmatpush.bf16.msrb.mxu3 %v2815_v27  ;;  %1500 = vmatpush.bf16.msra.mxu0 %v2827_v38 }
 0x34e   :  { %1513 = vmatpush.bf16.msrb.mxu1 %v2885_v26  ;;  %1526 = vmatpush.bf16.msra.mxu2 %v2859_v4 }
 0x351   :  { %1488 = vmatpush.bf16.msrb.mxu3 %v2824_v37  ;;  %1501 = vmatpush.bf16.msra.mxu0 %v2834_v44 }
 0x352   :  { %1514 = vmatpush.bf16.msrb.mxu1 %v2890_v33  ;;  %1527 = vmatpush.bf16.msra.mxu2 %v2866_v11 }
 0x3b0   :  { %v1249_v8 = vpop.f32.mrf.mxu0 }
 0x3b1   :  { %v1280_v55 = vadd.f32 %v1249_v8, %v3367_v58  ;;  %v1262_v21 = vpop.f32.mrf.mxu1 }
 0x3b2   :  { %v1281_v8 = vadd.f32 %v1262_v21, %v3370_v9 }
 0x3b3   :  { %v2160_v53 = vmul.f32 -1.442695, %v1280_v55 }
 0x3b5   :  { %2393 = vpow2.f32 %v2160_v53 }
 0x3b6   :  { %v1236_v49 = vpop.f32.mrf.mxu3 }
 0x3b7   :  { %v1279_v25 = vadd.f32 %v1236_v49, %v3368_v46  ;;  %v1275_v5 = vpop.f32.mrf.mxu2 }
 0x3b8   :  { %v1282_v16 = vadd.f32 %v1275_v5, %v3369_v45  ;;  %v1251_v20 = vpop.f32.mrf.mxu0 }
 0x3b9   :  { %v2159_v47 = vmul.f32 -1.442695, %v1279_v25  ;;  %v1264_v31 = vpop.f32.mrf.mxu1 }
 0x3ba   :  { %v2161_v43 = vmul.f32 -1.442695, %v1282_v16 }
 0x3bb   :  { %v2394_v19 = vpop.eup %2393  ;;  %2395 = vpow2.f32 %v2159_v47 }
 0x3bc   :  { %v1305_v15 = vadd.f32 1.0, %v2394_v19  ;;  %2397 = vpow2.f32 %v2161_v43 }
 0x3be   :  { %2399 = vrcp.f32 %v1305_v15  ;;  %v1238_v52 = vpop.f32.mrf.mxu3  ;;  %v1317_v49 = vand.u32 2147483648, %v1305_v15  ;;  %vm1311_vm10 = vweird.f32 %v1305_v15  ;;  %v1315_v25 = vand.u32 2147483647, %v1305_v15 }
 0x3bf   :  { %v1277_v23 = vpop.f32.mrf.mxu2 }
 0x3c0   :  { %v1318_v31 = vor.u32 1.1754944e-38, %v1317_v49  ;;  %vm1316_vm13 = vcmp.eq.f32.partialorder %v1315_v25, 8.507059e+37 }
 0x3c1   :  { %v2396_v29 = vpop.eup %2395 }
 0x3c2   :  { %v2398_v12 = vpop.eup %2397  ;;  %v1286_v0 = vadd.f32 1.0, %v2396_v29 }
 0x3c3   :  { %v1325_v7 = vadd.f32 1.0, %v2398_v12 }
 0x3c4   :  { %v2400_v62 = vpop.eup %2399  ;;  %2401 = vrcp.f32 %v1286_v0  ;;  %v1298_v45 = vand.u32 2147483648, %v1286_v0  ;;  %v1296_v47 = vand.u32 2147483647, %v1286_v0  ;;  %vm1292_vm14 = vweird.f32 %v1286_v0 }
 0x3c5   :  { %v1307_v41 = vmul.f32 %v2400_v62, %v1305_v15  ;;  %2403 = vrcp.f32 %v1325_v7  ;;  %vm1312_vm9 = vweird.f32 %v2400_v62  ;;  %v1337_v9 = vand.u32 2147483648, %v1325_v7 }
 0x3c6   :  { %vm1313_vm11 = vmor %vm1311_vm10, %vm1312_vm9  ;;  %2405 = vtanh.f32 %v1281_v8  ;;  %v1299_v52 = vor.u32 1.1754944e-38, %v1298_v45  ;;  %vm1297_vm0 = vcmp.eq.f32.partialorder %v1296_v47, 8.507059e+37  ;;  %vm1331_vm2 = vweird.f32 %v1325_v7 }
 0x3c7   :  { %v1308_v40 = vsub.f32 1.0, %v1307_v41 }
 0x3c9   :  { %v1309_v34 = vmul.f32 %v2400_v62, %v1308_v40 }
 0x3ca   :  { %v2402_v61 = vpop.eup %2401 }
 0x3cb   :  { %v2404_v58 = vpop.eup %2403  ;;  %v1310_v55 = vadd.f32 %v2400_v62, %v1309_v34  ;;  %v1288_v53 = vmul.f32 %v2402_v61, %v1286_v0  ;;  %vm1293_vm12 = vweird.f32 %v2402_v61  ;;  %v1335_v0 = vand.u32 2147483647, %v1325_v7 }
 0x3cc   :  { %v1327_v46 = vmul.f32 %v2404_v58, %v1325_v7  ;;  %vm1294_vm15 = vmor %vm1292_vm14, %vm1293_vm12  ;;  %v2406_v29 = vpop.eup %2405  ;;  %vm1332_vm1 = vweird.f32 %v2404_v58 }
 0x3cd   :  { %v1289_v5 = vsub.f32 1.0, %v1288_v53  ;;  %v1314_v16 = vsel %vm1313_vm11, %v2400_v62, %v1310_v55  ;;  %vm1333_vm3 = vmor %vm1331_vm2, %vm1332_vm1  ;;  %v1338_v55 = vor.u32 1.1754944e-38, %v1337_v9  ;;  %vm1336_vm4 = vcmp.eq.f32.partialorder %v1335_v0, 8.507059e+37 }
 0x3ce   :  { %v1328_v43 = vsub.f32 1.0, %v1327_v46  ;;  %v1319_v19 = vsel %vm1316_vm13, %v1318_v31, %v1314_v16 }
 0x3cf   :  { %v1290_v20 = vmul.f32 %v2402_v61, %v1289_v5  ;;  %v1341_v41 = vmul.f32 %v1319_v19, %v3214_v36 }
 0x3d0   :  { %v1329_v12 = vmul.f32 %v2404_v58, %v1328_v43 }
 0x3d1   :  { %v1291_v21 = vadd.f32 %v2402_v61, %v1290_v20 }
 0x3d2   :  { %v1330_v34 = vadd.f32 %v2404_v58, %v1329_v12 }
 0x3d3   :  { %v1295_v23 = vsel %vm1294_vm15, %v2402_v61, %v1291_v21 }
 0x3d4   :  { %v1300_v15 = vsel %vm1297_vm0, %v1299_v52, %v1295_v23  ;;  %v1334_v8 = vsel %vm1333_vm3, %v2404_v58, %v1330_v34 }
 0x3d5   :  { %v1342_v40 = vmul.f32 %v2406_v29, %v1300_v15  ;;  %v1339_v53 = vsel %vm1336_vm4, %v1338_v55, %v1334_v8 }
 0x3d7   :  { %v3254_v62 = vadd.f32 %v1342_v40, %v1341_v41 }
 0x3d9   :  { %2407 = vtanh.f32 %v3254_v62 }
 0x3df   :  { %v2408_v61 = vpop.eup %2407 }
 0x3e0   :  { %v1345_v49 = vmul.f32 %v2408_v61, %v1339_v53 }
 0x3e2   :  { %v1353_v46 = vpack.c.bf16 %v1345_v49, %v1345_v49 }
 0x3e4   :  { %1362 = vmatmul.bf16.vlgmr.msra.gmra.mxu3 %v1353_v46  ;;  %1375 = vmatmul.bf16.vlgmr.msrb.gmra.mxu0 %v1353_v46 }
 0x3e5   :  { %1388 = vmatmul.bf16.vlgmr.msra.gmra.mxu1 %v1353_v46  ;;  %1401 = vmatmul.bf16.vlgmr.msrb.gmra.mxu2 %v1353_v46 }
 0x3e6   :  { %1608 = vmatpush.bf16.msra.mxu3 %v2760_v32  ;;  %1621 = vmatpush.bf16.msrb.mxu0 %v2773_v51 }
 0x3e7   :  { %1634 = vmatpush.bf16.msra.mxu1 %v2840_v48  ;;  %1647 = vmatpush.bf16.msrb.mxu2 %v2803_v13  ;;  %v3373_v13 = vld [vmem:[#allocation38_spill] sm:$0xff] }
 0x3ea   :  { %1609 = vmatpush.bf16.msra.mxu3 %v2771_v42  ;;  %1622 = vmatpush.bf16.msrb.mxu0 %v2779_v57  ;;  %v3371_v42 = vld [vmem:[#allocation42_spill] sm:$0xff] }
 0x3eb   :  { %1635 = vmatpush.bf16.msra.mxu1 %v2847_v56  ;;  %1648 = vmatpush.bf16.msrb.mxu2 %v2812_v24 }
 0x3ee   :  { %1610 = vmatpush.bf16.msra.mxu3 %v2776_v54  ;;  %1623 = vmatpush.bf16.msrb.mxu0 %v2785_v63  ;;  %v3372_v63 = vld [vmem:[#allocation35_spill] sm:$0xff] }
 0x3ef   :  { %1636 = vmatpush.bf16.msra.mxu1 %v2855_v2  ;;  %1649 = vmatpush.bf16.msrb.mxu2 %v2821_v30 }
 0x3f2   :  { %1611 = vmatpush.bf16.msra.mxu3 %v2782_v60  ;;  %1624 = vmatpush.bf16.msrb.mxu0 %v2793_v6 }
 0x3f3   :  { %1637 = vmatpush.bf16.msra.mxu1 %v2862_v10  ;;  %1650 = vmatpush.bf16.msrb.mxu2 %v2830_v39 }
 0x3f6   :  { %1612 = vmatpush.bf16.msra.mxu3 %v2790_v3  ;;  %1625 = vmatpush.bf16.msrb.mxu0 %v2809_v18 }
 0x3f7   :  { %1638 = vmatpush.bf16.msra.mxu1 %v2873_v17  ;;  %1651 = vmatpush.bf16.msrb.mxu2 %v2844_v50  ;;  %v3374_v17 = vld [vmem:[#allocation37_spill] sm:$0xff] }
 0x3fa   :  { %1613 = vmatpush.bf16.msra.mxu3 %v2806_v14  ;;  %1626 = vmatpush.bf16.msrb.mxu0 %v2818_v28 }
 0x3fb   :  { %1639 = vmatpush.bf16.msra.mxu1 %v2880_v22  ;;  %1652 = vmatpush.bf16.msrb.mxu2 %v2852_v59 }
 0x3fe   :  { %1614 = vmatpush.bf16.msra.mxu3 %v2815_v27  ;;  %1627 = vmatpush.bf16.msrb.mxu0 %v2827_v38 }
 0x3ff   :  { %1640 = vmatpush.bf16.msra.mxu1 %v2885_v26  ;;  %1653 = vmatpush.bf16.msrb.mxu2 %v2859_v4 }
 0x402   :  { %1615 = vmatpush.bf16.msra.mxu3 %v2824_v37  ;;  %1628 = vmatpush.bf16.msrb.mxu0 %v2834_v44 }
 0x403   :  { %1641 = vmatpush.bf16.msra.mxu1 %v2890_v33  ;;  %1654 = vmatpush.bf16.msrb.mxu2 %v2866_v11 }
 0x461   :  { %v1376_v32 = vpop.f32.mrf.mxu0 }
 0x462   :  { %v1407_v51 = vadd.f32 %v1376_v32, %v3371_v42  ;;  %v1389_v54 = vpop.f32.mrf.mxu1  ;;  %v3375_v42 = vld [vmem:[#allocation45_spill] sm:$0xff] }
 0x463   :  { %v1408_v22 = vadd.f32 %v1389_v54, %v3374_v17 }
 0x464   :  { %v2163_v57 = vmul.f32 -1.442695, %v1407_v51 }
 0x466   :  { %2409 = vpow2.f32 %v2163_v57 }
 0x467   :  { %v1363_v60 = vpop.f32.mrf.mxu3 }
 0x468   :  { %v1406_v3 = vadd.f32 %v1363_v60, %v3372_v63  ;;  %v1402_v6 = vpop.f32.mrf.mxu2  ;;  %v2300_v60 = vld [vmem:[#allocation14 + $0x38] sm:$0xff] }
 0x469   :  { %v1409_v14 = vadd.f32 %v1402_v6, %v3373_v13  ;;  %v1378_v18 = vpop.f32.mrf.mxu0  ;;  %v3376_v6 = vld [vmem:[#allocation21_spill] sm:$0xff] }
 0x46a   :  { %v2162_v24 = vmul.f32 -1.442695, %v1406_v3  ;;  %v1391_v27 = vpop.f32.mrf.mxu1  ;;  %v2299_v3 = vld [vmem:[#allocation14 + $0x30] sm:$0xff]  ;;  %v3377_v18 = vld [vmem:[#allocation41_spill] sm:$0xff] }
 0x46b   :  { %v2164_v28 = vmul.f32 -1.442695, %v1409_v14 }
 0x46c   :  { %v2410_v30 = vpop.eup %2409  ;;  %2411 = vpow2.f32 %v2162_v24 }
 0x46d   :  { %v1432_v37 = vadd.f32 1.0, %v2410_v30  ;;  %2413 = vpow2.f32 %v2164_v28 }
 0x46f   :  { %2415 = vrcp.f32 %v1432_v37  ;;  %v1365_v38 = vpop.f32.mrf.mxu3  ;;  %v1444_v7 = vand.u32 2147483648, %v1432_v37  ;;  %vm1438_vm6 = vweird.f32 %v1432_v37  ;;  %v1442_v25 = vand.u32 2147483647, %v1432_v37 }
 0x470   :  { %v1404_v39 = vpop.f32.mrf.mxu2  ;;  %v2298_v38 = vld [vmem:[#allocation14 + $0x28] sm:$0xff] }
 0x471   :  { %v1445_v31 = vor.u32 1.1754944e-38, %v1444_v7  ;;  %vm1443_vm9 = vcmp.eq.f32.partialorder %v1442_v25, 8.507059e+37 }
 0x472   :  { %v2412_v44 = vpop.eup %2411 }
 0x473   :  { %v2414_v48 = vpop.eup %2413  ;;  %v1413_v50 = vadd.f32 1.0, %v2412_v44 }
 0x474   :  { %v1452_v56 = vadd.f32 1.0, %v2414_v48 }
 0x475   :  { %v2416_v59 = vpop.eup %2415  ;;  %2417 = vrcp.f32 %v1413_v50  ;;  %v1425_v45 = vand.u32 2147483648, %v1413_v50  ;;  %v1423_v47 = vand.u32 2147483647, %v1413_v50  ;;  %vm1419_vm10 = vweird.f32 %v1413_v50 }
 0x476   :  { %v1434_v2 = vmul.f32 %v2416_v59, %v1432_v37  ;;  %2419 = vrcp.f32 %v1452_v56  ;;  %vm1439_vm5 = vweird.f32 %v2416_v59  ;;  %v1464_v0 = vand.u32 2147483648, %v1452_v56 }
 0x477   :  { %vm1440_vm7 = vmor %vm1438_vm6, %vm1439_vm5  ;;  %2421 = vtanh.f32 %v1408_v22  ;;  %v1426_v52 = vor.u32 1.1754944e-38, %v1425_v45  ;;  %vm1424_vm12 = vcmp.eq.f32.partialorder %v1423_v47, 8.507059e+37  ;;  %vm1458_vm14 = vweird.f32 %v1452_v56  ;;  %v2296_v22 = vld [vmem:[#allocation14 + $0x18] sm:$0xff] }
 0x478   :  { %v1435_v4 = vsub.f32 1.0, %v1434_v2  ;;  %v1462_v8 = vand.u32 2147483647, %v1452_v56  ;;  %v1465_v61 = vor.u32 1.1754944e-38, %v1464_v0 }
 0x47a   :  { %v1436_v10 = vmul.f32 %v2416_v59, %v1435_v4  ;;  %vm1463_vm0 = vcmp.eq.f32.partialorder %v1462_v8, 8.507059e+37 }
 0x47b   :  { %v2418_v11 = vpop.eup %2417 }
 0x47c   :  { %v2420_v26 = vpop.eup %2419  ;;  %v1437_v33 = vadd.f32 %v2416_v59, %v1436_v10  ;;  %v1415_v36 = vmul.f32 %v2418_v11, %v1413_v50  ;;  %vm1420_vm8 = vweird.f32 %v2418_v11  ;;  %v2297_v50 = vld [vmem:[#allocation14 + $0x20] sm:$0xff] }
 0x47d   :  { %v1454_v58 = vmul.f32 %v2420_v26, %v1452_v56  ;;  %vm1421_vm11 = vmor %vm1419_vm10, %vm1420_vm8  ;;  %v2422_v29 = vpop.eup %2421  ;;  %vm1459_vm13 = vweird.f32 %v2420_v26 }
 0x47e   :  { %v1416_v5 = vsub.f32 1.0, %v1415_v36  ;;  %v1441_v16 = vsel %vm1440_vm7, %v2416_v59, %v1437_v33  ;;  %vm1460_vm15 = vmor %vm1458_vm14, %vm1459_vm13  ;;  %v2295_v33 = vld [vmem:[#allocation14 + $0x10] sm:$0xff] }
 0x47f   :  { %v1455_v43 = vsub.f32 1.0, %v1454_v58  ;;  %v1446_v19 = vsel %vm1443_vm9, %v1445_v31, %v1441_v16  ;;  %v3378_v58 = vld [vmem:[#allocation40_spill] sm:$0xff] }
 0x480   :  { %v1417_v20 = vmul.f32 %v2418_v11, %v1416_v5  ;;  %v1468_v41 = vmul.f32 %v1446_v19, %v3254_v62 }
 0x481   :  { %v1456_v12 = vmul.f32 %v2420_v26, %v1455_v43 }
 0x482   :  { %v1418_v21 = vadd.f32 %v2418_v11, %v1417_v20  ;;  %v2294_v20 = vld [vmem:[#allocation14 + $0x8] sm:$0xff] }
 0x483   :  { %v1457_v9 = vadd.f32 %v2420_v26, %v1456_v12 }
 0x484   :  { %v1422_v23 = vsel %vm1421_vm11, %v2418_v11, %v1418_v21 }
 0x485   :  { %v1427_v15 = vsel %vm1424_vm12, %v1426_v52, %v1422_v23  ;;  %v1461_v55 = vsel %vm1460_vm15, %v2420_v26, %v1457_v9 }
 0x486   :  { %v1469_v40 = vmul.f32 %v2422_v29, %v1427_v15  ;;  %v1466_v49 = vsel %vm1463_vm0, %v1465_v61, %v1461_v55  ;;  %v2293_v15 = vld [vmem:[#allocation14] sm:$0xff] }
 0x488   :  { %v3294_v34 = vadd.f32 %v1469_v40, %v1468_v41 }
 0x48a   :  { %2423 = vtanh.f32 %v3294_v34 }
 0x490   :  { %v2424_v53 = vpop.eup %2423 }
 0x491   :  { %v1472_v46 = vmul.f32 %v2424_v53, %v1466_v49 }
 0x493   :  { %v1480_v32 = vpack.c.bf16 %v1472_v46, %v1472_v46 }
 0x495   :  { %1489 = vmatmul.bf16.vlgmr.msrb.gmra.mxu3 %v1480_v32  ;;  %1502 = vmatmul.bf16.vlgmr.msra.gmra.mxu0 %v1480_v32 }
 0x496   :  { %1515 = vmatmul.bf16.vlgmr.msrb.gmra.mxu1 %v1480_v32  ;;  %1528 = vmatmul.bf16.vlgmr.msra.gmra.mxu2 %v1480_v32 }
 0x497   :  { %1809 = vmatpush.bf16.msrb.mxu3 %v2300_v60 }
 0x49b   :  { %1810 = vmatpush.bf16.msrb.mxu3 %v2299_v3 }
 0x49f   :  { %1811 = vmatpush.bf16.msrb.mxu3 %v2298_v38 }
 0x4a3   :  { %1812 = vmatpush.bf16.msrb.mxu3 %v2297_v50 }
 0x4a7   :  { %1813 = vmatpush.bf16.msrb.mxu3 %v2296_v22 }
 0x4ab   :  { %1814 = vmatpush.bf16.msrb.mxu3 %v2295_v33  ;;  %v2286_v33 = vld [vmem:[#allocation12 + $0x8] sm:$0xff] }
 0x4af   :  { %1815 = vmatpush.bf16.msrb.mxu3 %v2294_v20 }
 0x4b3   :  { %1816 = vmatpush.bf16.msrb.mxu3 %v2293_v15 }
 0x512   :  { %v1503_v62 = vpop.f32.mrf.mxu0 }
 0x513   :  { %v1534_v51 = vadd.f32 %v1503_v62, %v3375_v42  ;;  %v1516_v54 = vpop.f32.mrf.mxu1 }
 0x514   :  { %v1535_v25 = vadd.f32 %v1516_v54, %v3378_v58  ;;  %v2285_v58 = vld [vmem:[#allocation12] sm:$0xff] }
 0x515   :  { %v2166_v57 = vmul.f32 -1.442695, %v1534_v51 }
 0x517   :  { %2425 = vpow2.f32 %v2166_v57 }
 0x518   :  { %v1490_v63 = vpop.f32.mrf.mxu3 }
 0x519   :  { %v1533_v13 = vadd.f32 %v1490_v63, %v3376_v6  ;;  %v1529_v14 = vpop.f32.mrf.mxu2 }
 0x51a   :  { %v1536_v24 = vadd.f32 %v1529_v14, %v3377_v18  ;;  %v1505_v27 = vpop.f32.mrf.mxu0  ;;  %v2291_v14 = vld [vmem:[#allocation12 + $0x30] sm:$0xff]  ;;  %v2290_v18 = vld [vmem:[#allocation12 + $0x28] sm:$0xff] }
 0x51b   :  { %v2165_v28 = vmul.f32 -1.442695, %v1533_v13  ;;  %v1518_v30 = vpop.f32.mrf.mxu1  ;;  %v2292_v13 = vld [vmem:[#allocation12 + $0x38] sm:$0xff]  ;;  %v3379_v27 = vld [vmem:[#allocation46_spill] sm:$0xff] }
 0x51c   :  { %v2167_v37 = vmul.f32 -1.442695, %v1536_v24  ;;  %1870 = vmatpush.bf16.msra.mxu0 %v2292_v13 }
 0x51d   :  { %v2426_v39 = vpop.eup %2425  ;;  %2427 = vpow2.f32 %v2165_v28 }
 0x51e   :  { %v1559_v44 = vadd.f32 1.0, %v2426_v39  ;;  %2429 = vpow2.f32 %v2167_v37  ;;  %v2289_v37 = vld [vmem:[#allocation12 + $0x20] sm:$0xff]  ;;  %v3380_v39 = vld [vmem:[#allocation22_spill] sm:$0xff] }
 0x520   :  { %2431 = vrcp.f32 %v1559_v44  ;;  %v1492_v48 = vpop.f32.mrf.mxu3  ;;  %v1571_v47 = vand.u32 2147483648, %v1559_v44  ;;  %vm1565_vm2 = vweird.f32 %v1559_v44  ;;  %v1569_v43 = vand.u32 2147483647, %v1559_v44  ;;  %1871 = vmatpush.bf16.msra.mxu0 %v2291_v14 }
 0x521   :  { %v1531_v56 = vpop.f32.mrf.mxu2  ;;  %v2288_v48 = vld [vmem:[#allocation12 + $0x18] sm:$0xff] }
 0x522   :  { %v1572_v12 = vor.u32 1.1754944e-38, %v1571_v47  ;;  %vm1570_vm5 = vcmp.eq.f32.partialorder %v1569_v43, 8.507059e+37 }
 0x523   :  { %v2428_v59 = vpop.eup %2427 }
 0x524   :  { %v2430_v2 = vpop.eup %2429  ;;  %v1540_v4 = vadd.f32 1.0, %v2428_v59  ;;  %1872 = vmatpush.bf16.msra.mxu0 %v2290_v18  ;;  %v2287_v59 = vld [vmem:[#allocation12 + $0x10] sm:$0xff] }
 0x525   :  { %v1579_v10 = vadd.f32 1.0, %v2430_v2  ;;  %v3381_v2 = vld [vmem:[#allocation44_spill] sm:$0xff] }
 0x526   :  { %v2432_v11 = vpop.eup %2431  ;;  %2433 = vrcp.f32 %v1540_v4  ;;  %v1552_v19 = vand.u32 2147483648, %v1540_v4  ;;  %v1550_v29 = vand.u32 2147483647, %v1540_v4  ;;  %vm1546_vm6 = vweird.f32 %v1540_v4 }
 0x527   :  { %v1561_v17 = vmul.f32 %v2432_v11, %v1559_v44  ;;  %2435 = vrcp.f32 %v1579_v10  ;;  %vm1566_vm1 = vweird.f32 %v2432_v11  ;;  %v1591_v42 = vand.u32 2147483648, %v1579_v10 }
 0x528   :  { %vm1567_vm3 = vmor %vm1565_vm2, %vm1566_vm1  ;;  %2437 = vtanh.f32 %v1535_v25  ;;  %v1553_v0 = vor.u32 1.1754944e-38, %v1552_v19  ;;  %vm1551_vm8 = vcmp.eq.f32.partialorder %v1550_v29, 8.507059e+37  ;;  %vm1585_vm10 = vweird.f32 %v1579_v10  ;;  %1873 = vmatpush.bf16.msra.mxu0 %v2289_v37 }
 0x529   :  { %v1562_v26 = vsub.f32 1.0, %v1561_v17  ;;  %v1589_v51 = vand.u32 2147483647, %v1579_v10  ;;  %v1592_v57 = vor.u32 1.1754944e-38, %v1591_v42  ;;  %v267_v44 = vadd.f32 %v3380_v39, %v2947_v35 }
 0x52b   :  { %v1563_v36 = vmul.f32 %v2432_v11, %v1562_v26  ;;  %vm1590_vm12 = vcmp.eq.f32.partialorder %v1589_v51, 8.507059e+37 }
 0x52c   :  { %v2434_v7 = vpop.eup %2433  ;;  %1874 = vmatpush.bf16.msra.mxu0 %v2288_v48 }
 0x52d   :  { %v2436_v5 = vpop.eup %2435  ;;  %v1564_v45 = vadd.f32 %v2432_v11, %v1563_v36  ;;  %v1542_v16 = vmul.f32 %v2434_v7, %v1540_v4  ;;  %vm1547_vm4 = vweird.f32 %v2434_v7 }
 0x52e   :  { %v1581_v31 = vmul.f32 %v2436_v5, %v1579_v10  ;;  %vm1548_vm7 = vmor %vm1546_vm6, %vm1547_vm4  ;;  %v2438_v55 = vpop.eup %2437  ;;  %vm1586_vm9 = vweird.f32 %v2436_v5 }
 0x52f   :  { %v1543_v21 = vsub.f32 1.0, %v1542_v16  ;;  %v1568_v52 = vsel %vm1567_vm3, %v2432_v11, %v1564_v45  ;;  %vm1587_vm11 = vmor %vm1585_vm10, %vm1586_vm9 }
 0x530   :  { %v1582_v41 = vsub.f32 1.0, %v1581_v31  ;;  %v1573_v9 = vsel %vm1570_vm5, %v1572_v12, %v1568_v52  ;;  %1875 = vmatpush.bf16.msra.mxu0 %v2287_v59  ;;  %v3382_v52 = vld [vmem:[#allocation43_spill] sm:$0xff] }
 0x531   :  { %v1544_v23 = vmul.f32 %v2434_v7, %v1543_v21  ;;  %v1595_v49 = vmul.f32 %v1573_v9, %v3294_v34  ;;  %v1744_v34 = vpack.c.bf16 %v3088_v1, %v3088_v1 }
 0x532   :  { %v1583_v53 = vmul.f32 %v2436_v5, %v1582_v41 }
 0x533   :  { %v1545_v40 = vadd.f32 %v2434_v7, %v1544_v23 }
 0x534   :  { %v1584_v62 = vadd.f32 %v2436_v5, %v1583_v53  ;;  %1876 = vmatpush.bf16.msra.mxu0 %v2286_v33 }
 0x535   :  { %v1549_v8 = vsel %vm1548_vm7, %v2434_v7, %v1545_v40 }
 0x536   :  { %v1554_v61 = vsel %vm1551_vm8, %v1553_v0, %v1549_v8  ;;  %v1588_v54 = vsel %vm1587_vm11, %v2436_v5, %v1584_v62 }
 0x537   :  { %v1596_v46 = vmul.f32 %v2438_v55, %v1554_v61  ;;  %v1593_v63 = vsel %vm1590_vm12, %v1592_v57, %v1588_v54 }
 0x538   :  { %1877 = vmatpush.bf16.msra.mxu0 %v2285_v58 }
 0x539   :  { %v3302_v32 = vadd.f32 %v1596_v46, %v1595_v49 }
 0x53b   :  { %2439 = vtanh.f32 %v3302_v32 }
 0x541   :  { %v2440_v60 = vpop.eup %2439 }
 0x542   :  { %v1599_v3 = vmul.f32 %v2440_v60, %v1593_v63 }
 0x544   :  { %v1607_v6 = vpack.c.bf16 %v1599_v3, %v1599_v3 }
 0x546   :  { %1616 = vmatmul.bf16.vlgmr.msra.gmra.mxu3 %v1607_v6  ;;  %1629 = vmatmul.bf16.vlgmr.msrb.gmra.mxu0 %v1607_v6 }
 0x547   :  { %1642 = vmatmul.bf16.vlgmr.msra.gmra.mxu1 %v1607_v6  ;;  %1655 = vmatmul.bf16.vlgmr.msrb.gmra.mxu2 %v1607_v6 }
 0x556   :  { %1817 = vmatmul.bf16.vlgmr.msrb.gmra.mxu3 %v1744_v34 }
 0x5c3   :  { %v1630_v24 = vpop.f32.mrf.mxu0 }
 0x5c4   :  { %v1661_v28 = vadd.f32 %v1630_v24, %v3379_v27  ;;  %v1643_v30 = vpop.f32.mrf.mxu1 }
 0x5c5   :  { %v1662_v23 = vadd.f32 %v1643_v30, %v3382_v52 }
 0x5c6   :  { %v2169_v38 = vmul.f32 -1.442695, %v1661_v28 }
 0x5c8   :  { %2441 = vpow2.f32 %v2169_v38 }
 0x5c9   :  { %v1617_v1 = vpop.f32.mrf.mxu3 }
 0x5ca   :  { %v1660_v50 = vadd.f32 %v1617_v1, %v267_v44  ;;  %v1656_v56 = vpop.f32.mrf.mxu2 }
 0x5cb   :  { %v1663_v4 = vadd.f32 %v1656_v56, %v3381_v2  ;;  %v1632_v10 = vpop.f32.mrf.mxu0 }
 0x5cc   :  { %v2168_v11 = vmul.f32 -1.442695, %v1660_v50  ;;  %v1645_v17 = vpop.f32.mrf.mxu1 }
 0x5cd   :  { %v2170_v22 = vmul.f32 -1.442695, %v1663_v4 }
 0x5ce   :  { %v2442_v26 = vpop.eup %2441  ;;  %2443 = vpow2.f32 %v2168_v11 }
 0x5cf   :  { %v1686_v36 = vadd.f32 1.0, %v2442_v26  ;;  %2445 = vpow2.f32 %v2170_v22 }
 0x5d1   :  { %2447 = vrcp.f32 %v1686_v36  ;;  %v1619_v35 = vpop.f32.mrf.mxu3  ;;  %v1698_v41 = vand.u32 2147483648, %v1686_v36  ;;  %vm1692_vm14 = vweird.f32 %v1686_v36  ;;  %v1696_v9 = vand.u32 2147483647, %v1686_v36 }
 0x5d2   :  { %v1658_v7 = vpop.f32.mrf.mxu2 }
 0x5d3   :  { %v1699_v46 = vor.u32 1.1754944e-38, %v1698_v41  ;;  %vm1697_vm1 = vcmp.eq.f32.partialorder %v1696_v9, 8.507059e+37 }
 0x5d4   :  { %v2444_v25 = vpop.eup %2443 }
 0x5d5   :  { %v2446_v5 = vpop.eup %2445  ;;  %v1667_v45 = vadd.f32 1.0, %v2444_v25 }
 0x5d6   :  { %v1706_v16 = vadd.f32 1.0, %v2446_v5 }
 0x5d7   :  { %v2448_v20 = vpop.eup %2447  ;;  %2449 = vrcp.f32 %v1667_v45  ;;  %v1679_v8 = vand.u32 2147483648, %v1667_v45  ;;  %v1677_v49 = vand.u32 2147483647, %v1667_v45  ;;  %vm1673_vm2 = vweird.f32 %v1667_v45 }
 0x5d8   :  { %v1688_v47 = vmul.f32 %v2448_v20, %v1686_v36  ;;  %2451 = vrcp.f32 %v1706_v16  ;;  %vm1693_vm13 = vweird.f32 %v2448_v20  ;;  %v1718_v18 = vand.u32 2147483648, %v1706_v16 }
 0x5d9   :  { %v1818_v31 = vpop.f32.mrf.mxu3  ;;  %vm1694_vm15 = vmor %vm1692_vm14, %vm1693_vm13  ;;  %2453 = vtanh.f32 %v1662_v23  ;;  %v1680_v54 = vor.u32 1.1754944e-38, %v1679_v8  ;;  %vm1678_vm4 = vcmp.eq.f32.partialorder %v1677_v49, 8.507059e+37  ;;  %vm1712_vm6 = vweird.f32 %v1706_v16 }
 0x5da   :  { %v1689_v43 = vsub.f32 1.0, %v1688_v47  ;;  %v1716_v24 = vand.u32 2147483647, %v1706_v16  ;;  %v1719_v28 = vor.u32 1.1754944e-38, %v1718_v18 }
 0x5dc   :  { %v1690_v21 = vmul.f32 %v2448_v20, %v1689_v43  ;;  %vm1717_vm8 = vcmp.eq.f32.partialorder %v1716_v24, 8.507059e+37 }
 0x5dd   :  { %v2450_v19 = vpop.eup %2449 }
 0x5de   :  { %v2452_v29 = vpop.eup %2451  ;;  %v1691_v15 = vadd.f32 %v2448_v20, %v1690_v21  ;;  %v1669_v12 = vmul.f32 %v2450_v19, %v1667_v45  ;;  %vm1674_vm0 = vweird.f32 %v2450_v19 }
 0x5df   :  { %v1708_v40 = vmul.f32 %v2452_v29, %v1706_v16  ;;  %vm1675_vm3 = vmor %vm1673_vm2, %vm1674_vm0  ;;  %v2454_v60 = vpop.eup %2453  ;;  %vm1713_vm5 = vweird.f32 %v2452_v29 }
 0x5e0   :  { %v1670_v0 = vsub.f32 1.0, %v1669_v12  ;;  %v1695_v61 = vsel %vm1694_vm15, %v2448_v20, %v1691_v15  ;;  %vm1714_vm7 = vmor %vm1712_vm6, %vm1713_vm5 }
 0x5e1   :  { %v1820_v55 = vpop.f32.mrf.mxu3  ;;  %v1709_v62 = vsub.f32 1.0, %v1708_v40  ;;  %v1700_v51 = vsel %vm1697_vm1, %v1699_v46, %v1695_v61 }
 0x5e2   :  { %v1671_v53 = vmul.f32 %v2450_v19, %v1670_v0  ;;  %v1722_v6 = vmul.f32 %v1700_v51, %v3302_v32  ;;  %v2316_v32 = vld [vmem:[%s3327_s8] ss:$0 sm:$0xff]  ;;  %s1906_s8 = sshll.u32 %s3328_s9, 4  ;;  %s1907_s8 = int_to_ptr.hbm [resolvable:$true] %s1906_s8 }
 0x5e3   :  { %v1710_v3 = vmul.f32 %v2452_v29, %v1709_v62 }
 0x5e4   :  { %v1672_v42 = vadd.f32 %v2450_v19, %v1671_v53 }
 0x5e5   :  { %v1711_v14 = vadd.f32 %v2452_v29, %v1710_v3 }
 0x5e6   :  { %v1676_v57 = vsel %vm1675_vm3, %v2450_v19, %v1672_v42 }
 0x5e7   :  { %v1681_v63 = vsel %vm1678_vm4, %v1680_v54, %v1676_v57  ;;  %v1715_v27 = vsel %vm1714_vm7, %v2452_v29, %v1711_v14 }
 0x5e8   :  { %v1723_v34 = vmul.f32 %v2454_v60, %v1681_v63  ;;  %v1720_v37 = vsel %vm1717_vm8, %v1719_v28, %v1715_v27 }
 0x5ea   :  { %v1724_v13 = vadd.f32 %v1723_v34, %v1722_v6 }
 0x5ec   :  { %2455 = vtanh.f32 %v1724_v13 }
 0x5f2   :  { %v2456_v30 = vpop.eup %2455 }
 0x5f3   :  { %v1726_v38 = vmul.f32 %v2456_v30, %v1720_v37 }
 0x5f5   :  { %v1727_v39 = vpack.c.bf16 %v1726_v38, %v1726_v38 }
 0x5f7   :  { %1878 = vmatmul.bf16.vlgmr.msra.gmra.mxu0 %v1727_v39 }
 0x674   :  { %v1879_v44 = vpop.f32.mrf.mxu0 }
 0x675   :  { %v1880_v48 = vadd.f32 %v1879_v44, %v1818_v31 }
 0x677   :  { %v1887_v1 = vadd.f32 %v2316_v32, %v1880_v48 }
 0x679   :  { %1888 = vmax.xlane.f32.xlu0 %v1887_v1 }
 0x67c   :  { %v1881_v50 = vpop.f32.mrf.mxu0 }
 0x6ec   :  { %v1889_v56 = vpop.xlane.xlu0 %1888 }
 0x6ed   :  { %v1890_v59 = vsub.f32 %v1887_v1, %v1889_v56 }
 0x6ef   :  { %v1891_v2 = vmul.f32 1.442695, %v1890_v59 }
 0x6f1   :  { %2457 = vpow2.f32 %v1891_v2 }
 0x6f7   :  { %v2458_v4 = vpop.eup %2457 }
 0x6f8   :  { %1893 = vadd.xlane.f32.xlu0 %v2458_v4 }
 0x76b   :  { %v1894_v10 = vpop.xlane.xlu0 %1893 }
 0x76c   :  { %2459 = vlog2.f32 %v1894_v10 }
 0x772   :  { %v2460_v11 = vpop.eup %2459 }
 0x773   :  { %v1896_v17 = vmul.f32 0.6931472, %v2460_v11 }
 0x775   :  { %v1897_v22 = vsub.f32 %v1890_v59, %v1896_v17 }
 0x777   :  { %1898 = vst [vmem:[#allocation15] sm:$0xff] %v1897_v22 }
 0x778   :  { %1909 = dma.vmem_to_hbm [thread:$0]  %s1905_s23, 128, %s1907_s8, [#allocation5]  }
 0x779   :  { %2661 = dma.done.wait [#allocation5], 128  }
 0x77a   :  { %2662 = vsyncadd [#allocation5], 4294967168 }
 0x77b   :  { %1914 = vsyncpa [#allocation4], 1 }
 0x77c   :  { %1915 = vsyncpa [#allocation7], 1 }
 0x77d   :  { %1916 = vsyncpa [#allocation10], 1 }
 0x77e   :  { %1917 = vsyncpa [#allocation13], 1 }
 0x77f   :  { %1918 = vsyncpa [#allocation5], 1 }

</bundles_post_ra>
